<compile_context>
chip_gen: v5e
topology: v5e:2x2
jax: 0.10.0
libtpu: 0.0.40
codegen_flags: <defaults>
</compile_context>

<pallas_src>
import math

import jax
import jax.numpy as jnp
from jax import lax
from jax.experimental import pallas as pl
from jax.experimental.pallas import tpu as pltpu

# ----------------------------- config (small) --------------------------------
VOCAB = 100
MAX_POS = 16
HIDDEN = 32
NUM_HEADS = 2
HEAD_DIM = HIDDEN // NUM_HEADS
FFN = 64
NUM_LAYERS = 2
NUM_CLASSES = 3
NUM_NER_LABELS = 5
LN_EPS = 1e-12
LANE = 128                       # lane-dense padded width for the head outputs

# packed-vector row indices (all H-wide vectors live in one (NV, 1, H) array)
_V_EMB_G, _V_EMB_B, _V_BC1 = 0, 1, 2
_V_PER_LAYER = 6                 # per layer: bo, ln1_g, ln1_b, b2, ln2_g, ln2_b
_NV = 3 + _V_PER_LAYER * NUM_LAYERS


# ----------------------------- kernel helpers --------------------------------
def _layer_norm(x, gamma, beta):
    mu = jnp.mean(x, axis=-1, keepdims=True)
    var = jnp.mean(jnp.square(x - mu), axis=-1, keepdims=True)
    return (x - mu) * lax.rsqrt(var + LN_EPS) * gamma + beta


# ------------------------------ fused Pallas kernel ----------------------------
def _fused_forward_kernel(x_ref, bias_ref,
                          wqkv_ref, bqkv_ref, wo_ref,
                          w1_ref, b1_ref, w2_ref,
                          vecs_ref, wc1_ref, wheads_ref, bheads_ref,
                          out_a_ref, out_b_ref):
    # Whole batch as one slab: x_ref is (B*S, H); bias_ref is the (B*S, B*S)
    # block-diagonal + key-padding additive attention bias (hoisted, reused every layer/head).
    x = x_ref[...]
    neg_bias = bias_ref[...]

    # Embedding LayerNorm.
    x = _layer_norm(x, vecs_ref[_V_EMB_G], vecs_ref[_V_EMB_B])

    scale = 1.0 / math.sqrt(HEAD_DIM)
    for l in range(NUM_LAYERS):                    # static, fully fused layer loop (L=2)
        base = 3 + l * _V_PER_LAYER

        # ---- multi-head self-attention: heads pre-split in the weight layout ----
        attn = None
        for h in range(NUM_HEADS):
            qh = jnp.dot(x, wqkv_ref[l, h, 0],
                         preferred_element_type=jnp.float32) + bqkv_ref[l, h, 0]
            kh = jnp.dot(x, wqkv_ref[l, h, 1],
                         preferred_element_type=jnp.float32) + bqkv_ref[l, h, 1]
            vh = jnp.dot(x, wqkv_ref[l, h, 2],
                         preferred_element_type=jnp.float32) + bqkv_ref[l, h, 2]

            # q @ k^T as a contraction of the last dims (no explicit transpose).
            scores = lax.dot_general(qh, kh, (((1,), (1,)), ((), ())),
                                     preferred_element_type=jnp.float32) * scale
            scores = scores + neg_bias
            scores = scores - jnp.max(scores, axis=-1, keepdims=True)
            p = jnp.exp(scores)
            p = p * pl.reciprocal(jnp.sum(p, axis=-1, keepdims=True), approx=True)
            ctx = jnp.dot(p, vh, preferred_element_type=jnp.float32)

            # Per-head output projection accumulated directly (no lane concat).
            contrib = jnp.dot(ctx, wo_ref[l, h], preferred_element_type=jnp.float32)
            attn = contrib if attn is None else attn + contrib

        attn = attn + vecs_ref[base + 0]                                   # bo
        x = _layer_norm(x + attn, vecs_ref[base + 1], vecs_ref[base + 2])  # LN1

        # ---- feed-forward ----
        h1 = jnp.dot(x, w1_ref[l], preferred_element_type=jnp.float32) + b1_ref[l]
        h1 = jax.nn.gelu(h1, approximate=True)     # tanh-GELU (HF BERT: erf-GELU)
        ffn = jnp.dot(h1, w2_ref[l], preferred_element_type=jnp.float32) + vecs_ref[base + 3]
        x = _layer_norm(x + ffn, vecs_ref[base + 4], vecs_ref[base + 5])   # LN2

    # ---- heads on the full slab (row-wise; CLS rows sliced in the wrapper) ----
    c1 = jnp.dot(x, wc1_ref[...], preferred_element_type=jnp.float32) + vecs_ref[_V_BC1]
    c1 = jnp.maximum(c1, 0.0)                      # ReLU
    out_a_ref[...] = jnp.dot(c1, wheads_ref[0],
                             preferred_element_type=jnp.float32) + bheads_ref[0]
    out_b_ref[...] = jnp.dot(x, wheads_ref[1],
                             preferred_element_type=jnp.float32) + bheads_ref[1]


# ------------------------------ pallas wrapper --------------------------------
def _full_spec(shape):
    nd = len(shape)
    return pl.BlockSpec(shape, lambda i, _nd=nd: (0,) * _nd)   # block == full array


_WEIGHT_NAMES = ('wqkv', 'bqkv', 'wo_h', 'w1', 'b1', 'w2',
                 'vecs', 'wc1', 'wheads', 'bheads')


def multi_task_forward(packed, input_ids, attention_mask):
    B, S = input_ids.shape
    BS = B * S

    # Embedding lookup is glue (gather) in plain JAX; batch is folded into one slab.
    tok = jnp.take(packed['tok_emb'], input_ids, axis=0)              # (B, S, H)
    pos = packed['pos_emb'][:S][None, :, :]                           # (1, S, H)
    x = (tok + pos).astype(jnp.float32).reshape(BS, HIDDEN)           # (B*S, H)

    # Block-diagonal (per-sequence) + key-padding additive attention bias.
    seq_ids = jnp.repeat(jnp.arange(B, dtype=jnp.int32), S)           # (BS,)
    same_seq = seq_ids[:, None] == seq_ids[None, :]                   # (BS, BS)
    key_ok = attention_mask.astype(jnp.float32).reshape(BS)           # (BS,)
    allowed = jnp.where(same_seq, key_ok[None, :], 0.0)               # (BS, BS)
    neg_bias = (1.0 - allowed) * (-1e9)

    weight_args = [packed[n] for n in _WEIGHT_NAMES]
    in_specs = ([_full_spec((BS, HIDDEN)), _full_spec((BS, BS))]
                + [_full_spec(w.shape) for w in weight_args])

    out_a, out_b = pl.pallas_call(
        _fused_forward_kernel,
        grid=(1,),                                                    # single fused step
        in_specs=in_specs,
        out_specs=[pl.BlockSpec((BS, LANE), lambda i: (0, 0)),
                   pl.BlockSpec((BS, LANE), lambda i: (0, 0))],
        out_shape=(jax.ShapeDtypeStruct((BS, LANE), jnp.float32),
                   jax.ShapeDtypeStruct((BS, LANE), jnp.float32)),
        compiler_params=pltpu.CompilerParams(dimension_semantics=("arbitrary",)),
    )(x, neg_bias, *weight_args)

    logits_task_a = out_a[0::S, :NUM_CLASSES]                         # CLS rows -> (B, C)
    logits_task_b = out_b[:, :NUM_NER_LABELS].reshape(B, S, NUM_NER_LABELS)
    return logits_task_a, logits_task_b


# ------------------------------ parameter init / pack ----------------------------
def init_params(key):
    keys = iter(jax.random.split(key, 64))

    def normal(shape, scale=0.02):
        return (scale * jax.random.normal(next(keys), shape)).astype(jnp.float32)

    def zeros(shape):
        return jnp.zeros(shape, jnp.float32)

    def ones(shape):
        return jnp.ones(shape, jnp.float32)

    L, H = NUM_LAYERS, HIDDEN
    return {
        'tok_emb': normal((VOCAB, H)),
        'pos_emb': normal((MAX_POS, H)),
        'emb_ln_g': ones((H,)), 'emb_ln_b': zeros((H,)),
        'wq': normal((L, H, H)), 'bq': zeros((L, H)),
        'wk': normal((L, H, H)), 'bk': zeros((L, H)),
        'wv': normal((L, H, H)), 'bv': zeros((L, H)),
        'wo': normal((L, H, H)), 'bo': zeros((L, H)),
        'ln1_g': ones((L, H)), 'ln1_b': zeros((L, H)),
        'w1': normal((L, H, FFN)), 'b1': zeros((L, FFN)),
        'w2': normal((L, FFN, H)), 'b2': zeros((L, H)),
        'ln2_g': ones((L, H)), 'ln2_b': zeros((L, H)),
        # heads: nn.Sequential(Linear(H,H), ReLU, Linear(H,C)) and Linear(H,NER)
        'wc1': normal((H, H)), 'bc1': zeros((H,)),
        'wc2': normal((H, NUM_CLASSES)), 'bc2': zeros((NUM_CLASSES,)),
        'wner': normal((H, NUM_NER_LABELS)), 'bner': zeros((NUM_NER_LABELS,)),
    }


def pack_params(p):
    """One-time (outside jit) re-layout into kernel-ready, lane-friendly arrays."""
    L, H, NH, HD = NUM_LAYERS, HIDDEN, NUM_HEADS, HEAD_DIM

    def split_w(w):          # (L, H, H) -> (L, NH, H, HD): head h <- output cols h*HD:(h+1)*HD
        return w.reshape(L, H, NH, HD).transpose(0, 2, 1, 3)

    def split_b(b):          # (L, H) -> (L, NH, 1, HD)
        return b.reshape(L, NH, 1, HD)

    wqkv = jnp.stack([split_w(p['wq']), split_w(p['wk']), split_w(p['wv'])], axis=2)
    bqkv = jnp.stack([split_b(p['bq']), split_b(p['bk']), split_b(p['bv'])], axis=2)
    wo_h = p['wo'].reshape(L, NH, HD, H)                          # input rows of head h

    vec_rows = [p['emb_ln_g'], p['emb_ln_b'], p['bc1']]
    for l in range(L):
        vec_rows += [p['bo'][l], p['ln1_g'][l], p['ln1_b'][l],
                     p['b2'][l], p['ln2_g'][l], p['ln2_b'][l]]
    vecs = jnp.stack(vec_rows, axis=0).reshape(_NV, 1, H)

    wheads = jnp.zeros((2, H, LANE), jnp.float32)
    wheads = wheads.at[0, :, :NUM_CLASSES].set(p['wc2'])
    wheads = wheads.at[1, :, :NUM_NER_LABELS].set(p['wner'])
    bheads = jnp.zeros((2, 1, LANE), jnp.float32)
    bheads = bheads.at[0, 0, :NUM_CLASSES].set(p['bc2'])
    bheads = bheads.at[1, 0, :NUM_NER_LABELS].set(p['bner'])

    return {
        'tok_emb': p['tok_emb'], 'pos_emb': p['pos_emb'],
        'wqkv': wqkv, 'bqkv': bqkv, 'wo_h': wo_h,
        'w1': p['w1'], 'b1': p['b1'].reshape(L, 1, FFN), 'w2': p['w2'],
        'vecs': vecs, 'wc1': p['wc1'], 'wheads': wheads, 'bheads': bheads,
    }


# ----------------------------------- main ---------------------------------------
if __name__ == "__main__":
    key = jax.random.PRNGKey(0)
    k_param, k_ids = jax.random.split(key)

    B, S = 2, 8
    params = init_params(k_param)
    packed = pack_params(params)                    # one-time re-layout, outside jit

    input_ids = jax.random.randint(k_ids, (B, S), 0, VOCAB, dtype=jnp.int32)
    attention_mask = jnp.array([[1, 1, 1, 1, 1, 1, 1, 1],
                                [1, 1, 1, 1, 1, 1, 0, 0]], dtype=jnp.int32)

    fwd = jax.jit(multi_task_forward)
    logits_a, logits_b = fwd(packed, input_ids, attention_mask)
    jax.block_until_ready((logits_a, logits_b))

    assert logits_a.shape == (B, NUM_CLASSES)
    assert logits_b.shape == (B, S, NUM_NER_LABELS)
    assert bool(jnp.all(jnp.isfinite(logits_a))) and bool(jnp.all(jnp.isfinite(logits_b)))
    print("KERNEL_OK")
</pallas_src>

<mosaic_0001>
module attributes {stable_mosaic.version = 11 : i64} {
  func.func @_fused_forward_kernel(%arg0: i32, %arg1: memref<16x32xf32, #tpu.memory_space<vmem>>, %arg2: memref<16x16xf32, #tpu.memory_space<vmem>>, %arg3: memref<2x2x3x32x16xf32, #tpu.memory_space<vmem>>, %arg4: memref<2x2x3x1x16xf32, #tpu.memory_space<vmem>>, %arg5: memref<2x2x16x32xf32, #tpu.memory_space<vmem>>, %arg6: memref<2x32x64xf32, #tpu.memory_space<vmem>>, %arg7: memref<2x1x64xf32, #tpu.memory_space<vmem>>, %arg8: memref<2x64x32xf32, #tpu.memory_space<vmem>>, %arg9: memref<15x1x32xf32, #tpu.memory_space<vmem>>, %arg10: memref<32x32xf32, #tpu.memory_space<vmem>>, %arg11: memref<2x32x128xf32, #tpu.memory_space<vmem>>, %arg12: memref<2x1x128xf32, #tpu.memory_space<vmem>>, %arg13: memref<16x128xf32, #tpu.memory_space<vmem>>, %arg14: memref<16x128xf32, #tpu.memory_space<vmem>>) attributes {dimension_semantics = [#tpu.dimension_semantics<arbitrary>], iteration_bounds = array<i64: 1>, scalar_prefetch = 0 : i64, scratch_operands = 0 : i64, tpu.core_type = #tpu.core_type<tc>, window_params = [{pipeline_mode = #tpu.pipeline_mode<synchronous>, transform_indices = @transform_0, window_bounds = array<i64: 16, 32>}, {pipeline_mode = #tpu.pipeline_mode<synchronous>, transform_indices = @transform_1, window_bounds = array<i64: 16, 16>}, {pipeline_mode = #tpu.pipeline_mode<synchronous>, transform_indices = @transform_2, window_bounds = array<i64: 2, 2, 3, 32, 16>}, {pipeline_mode = #tpu.pipeline_mode<synchronous>, transform_indices = @transform_3, window_bounds = array<i64: 2, 2, 3, 1, 16>}, {pipeline_mode = #tpu.pipeline_mode<synchronous>, transform_indices = @transform_4, window_bounds = array<i64: 2, 2, 16, 32>}, {pipeline_mode = #tpu.pipeline_mode<synchronous>, transform_indices = @transform_5, window_bounds = array<i64: 2, 32, 64>}, {pipeline_mode = #tpu.pipeline_mode<synchronous>, transform_indices = @transform_6, window_bounds = array<i64: 2, 1, 64>}, {pipeline_mode = #tpu.pipeline_mode<synchronous>, transform_indices = @transform_7, window_bounds = array<i64: 2, 64, 32>}, {pipeline_mode = #tpu.pipeline_mode<synchronous>, transform_indices = @transform_8, window_bounds = array<i64: 15, 1, 32>}, {pipeline_mode = #tpu.pipeline_mode<synchronous>, transform_indices = @transform_9, window_bounds = array<i64: 32, 32>}, {pipeline_mode = #tpu.pipeline_mode<synchronous>, transform_indices = @transform_10, window_bounds = array<i64: 2, 32, 128>}, {pipeline_mode = #tpu.pipeline_mode<synchronous>, transform_indices = @transform_11, window_bounds = array<i64: 2, 1, 128>}, {pipeline_mode = #tpu.pipeline_mode<synchronous>, transform_indices = @transform_12, window_bounds = array<i64: 16, 128>}, {pipeline_mode = #tpu.pipeline_mode<synchronous>, transform_indices = @transform_13, window_bounds = array<i64: 16, 128>}]} {
    %c0 = arith.constant 0 : index
    %c0_0 = arith.constant 0 : index
    %0 = vector.load %arg1[%c0, %c0_0] : memref<16x32xf32, #tpu.memory_space<vmem>>, vector<16x32xf32>
    %c0_1 = arith.constant 0 : index
    %c0_2 = arith.constant 0 : index
    %1 = vector.load %arg2[%c0_1, %c0_2] : memref<16x16xf32, #tpu.memory_space<vmem>>, vector<16x16xf32>
    %c0_3 = arith.constant 0 : index
    %c0_4 = arith.constant 0 : index
    %c0_5 = arith.constant 0 : index
    %2 = vector.load %arg9[%c0_3, %c0_4, %c0_5] : memref<15x1x32xf32, #tpu.memory_space<vmem>>, vector<1x1x32xf32>
    %3 = vector.shape_cast %2 : vector<1x1x32xf32> to vector<1x32xf32>
    %c1 = arith.constant 1 : index
    %c0_6 = arith.constant 0 : index
    %c0_7 = arith.constant 0 : index
    %4 = vector.load %arg9[%c1, %c0_6, %c0_7] : memref<15x1x32xf32, #tpu.memory_space<vmem>>, vector<1x1x32xf32>
    %5 = vector.shape_cast %4 : vector<1x1x32xf32> to vector<1x32xf32>
    %cst = arith.constant dense<0.000000e+00> : vector<16xf32>
    %6 = vector.multi_reduction <add>, %0, %cst [1] : vector<16x32xf32> to vector<16xf32>
    %7 = vector.shape_cast %6 : vector<16xf32> to vector<16x1xf32>
    %cst_8 = arith.constant 3.200000e+01 : f32
    %8 = vector.broadcast %cst_8 : f32 to vector<16x1xf32>
    %9 = arith.divf %7, %8 : vector<16x1xf32>
    %10 = vector.broadcast %9 : vector<16x1xf32> to vector<16x32xf32>
    %11 = arith.subf %0, %10 : vector<16x32xf32>
    %12 = arith.mulf %11, %11 : vector<16x32xf32>
    %cst_9 = arith.constant dense<0.000000e+00> : vector<16xf32>
    %13 = vector.multi_reduction <add>, %12, %cst_9 [1] : vector<16x32xf32> to vector<16xf32>
    %14 = vector.shape_cast %13 : vector<16xf32> to vector<16x1xf32>
    %cst_10 = arith.constant 3.200000e+01 : f32
    %15 = vector.broadcast %cst_10 : f32 to vector<16x1xf32>
    %16 = arith.divf %14, %15 : vector<16x1xf32>
    %17 = vector.broadcast %9 : vector<16x1xf32> to vector<16x32xf32>
    %18 = arith.subf %0, %17 : vector<16x32xf32>
    %cst_11 = arith.constant 9.99999996E-13 : f32
    %19 = vector.broadcast %cst_11 : f32 to vector<16x1xf32>
    %20 = arith.addf %16, %19 : vector<16x1xf32>
    %21 = math.rsqrt %20 : vector<16x1xf32>
    %22 = vector.broadcast %21 : vector<16x1xf32> to vector<16x32xf32>
    %23 = arith.mulf %18, %22 : vector<16x32xf32>
    %24 = vector.broadcast %3 : vector<1x32xf32> to vector<16x32xf32>
    %25 = arith.mulf %23, %24 : vector<16x32xf32>
    %26 = vector.broadcast %5 : vector<1x32xf32> to vector<16x32xf32>
    %27 = arith.addf %25, %26 : vector<16x32xf32>
    %c0_12 = arith.constant 0 : index
    %c0_13 = arith.constant 0 : index
    %c0_14 = arith.constant 0 : index
    %c0_15 = arith.constant 0 : index
    %c0_16 = arith.constant 0 : index
    %28 = vector.load %arg3[%c0_12, %c0_13, %c0_14, %c0_15, %c0_16] : memref<2x2x3x32x16xf32, #tpu.memory_space<vmem>>, vector<1x1x1x32x16xf32>
    %29 = vector.shape_cast %28 : vector<1x1x1x32x16xf32> to vector<32x16xf32>
    %cst_17 = arith.constant dense<0.000000e+00> : vector<16x16xf32>
    %30 = tpu.matmul %27, %29, %cst_17 {dimension_numbers = #tpu.dot_dimension_numbers<[1], [0], [0], [1], [0, 0, 1, 1], [], []>} : vector<16x32xf32>, vector<32x16xf32>, vector<16x16xf32> -> vector<16x16xf32>
    %c0_18 = arith.constant 0 : index
    %c0_19 = arith.constant 0 : index
    %c0_20 = arith.constant 0 : index
    %c0_21 = arith.constant 0 : index
    %c0_22 = arith.constant 0 : index
    %31 = vector.load %arg4[%c0_18, %c0_19, %c0_20, %c0_21, %c0_22] : memref<2x2x3x1x16xf32, #tpu.memory_space<vmem>>, vector<1x1x1x1x16xf32>
    %32 = vector.shape_cast %31 : vector<1x1x1x1x16xf32> to vector<1x16xf32>
    %33 = vector.broadcast %32 : vector<1x16xf32> to vector<16x16xf32>
    %34 = arith.addf %30, %33 : vector<16x16xf32>
    %c0_23 = arith.constant 0 : index
    %c0_24 = arith.constant 0 : index
    %c1_25 = arith.constant 1 : index
    %c0_26 = arith.constant 0 : index
    %c0_27 = arith.constant 0 : index
    %35 = vector.load %arg3[%c0_23, %c0_24, %c1_25, %c0_26, %c0_27] : memref<2x2x3x32x16xf32, #tpu.memory_space<vmem>>, vector<1x1x1x32x16xf32>
    %36 = vector.shape_cast %35 : vector<1x1x1x32x16xf32> to vector<32x16xf32>
    %cst_28 = arith.constant dense<0.000000e+00> : vector<16x16xf32>
    %37 = tpu.matmul %27, %36, %cst_28 {dimension_numbers = #tpu.dot_dimension_numbers<[1], [0], [0], [1], [0, 0, 1, 1], [], []>} : vector<16x32xf32>, vector<32x16xf32>, vector<16x16xf32> -> vector<16x16xf32>
    %c0_29 = arith.constant 0 : index
    %c0_30 = arith.constant 0 : index
    %c1_31 = arith.constant 1 : index
    %c0_32 = arith.constant 0 : index
    %c0_33 = arith.constant 0 : index
    %38 = vector.load %arg4[%c0_29, %c0_30, %c1_31, %c0_32, %c0_33] : memref<2x2x3x1x16xf32, #tpu.memory_space<vmem>>, vector<1x1x1x1x16xf32>
    %39 = vector.shape_cast %38 : vector<1x1x1x1x16xf32> to vector<1x16xf32>
    %40 = vector.broadcast %39 : vector<1x16xf32> to vector<16x16xf32>
    %41 = arith.addf %37, %40 : vector<16x16xf32>
    %c0_34 = arith.constant 0 : index
    %c0_35 = arith.constant 0 : index
    %c2 = arith.constant 2 : index
    %c0_36 = arith.constant 0 : index
    %c0_37 = arith.constant 0 : index
    %42 = vector.load %arg3[%c0_34, %c0_35, %c2, %c0_36, %c0_37] : memref<2x2x3x32x16xf32, #tpu.memory_space<vmem>>, vector<1x1x1x32x16xf32>
    %43 = vector.shape_cast %42 : vector<1x1x1x32x16xf32> to vector<32x16xf32>
    %cst_38 = arith.constant dense<0.000000e+00> : vector<16x16xf32>
    %44 = tpu.matmul %27, %43, %cst_38 {dimension_numbers = #tpu.dot_dimension_numbers<[1], [0], [0], [1], [0, 0, 1, 1], [], []>} : vector<16x32xf32>, vector<32x16xf32>, vector<16x16xf32> -> vector<16x16xf32>
    %c0_39 = arith.constant 0 : index
    %c0_40 = arith.constant 0 : index
    %c2_41 = arith.constant 2 : index
    %c0_42 = arith.constant 0 : index
    %c0_43 = arith.constant 0 : index
    %45 = vector.load %arg4[%c0_39, %c0_40, %c2_41, %c0_42, %c0_43] : memref<2x2x3x1x16xf32, #tpu.memory_space<vmem>>, vector<1x1x1x1x16xf32>
    %46 = vector.shape_cast %45 : vector<1x1x1x1x16xf32> to vector<1x16xf32>
    %47 = vector.broadcast %46 : vector<1x16xf32> to vector<16x16xf32>
    %48 = arith.addf %44, %47 : vector<16x16xf32>
    %cst_44 = arith.constant dense<0.000000e+00> : vector<16x16xf32>
    %49 = tpu.matmul %34, %41, %cst_44 {dimension_numbers = #tpu.dot_dimension_numbers<[1], [1], [0], [0], [0, 0, 1, 0], [], []>} : vector<16x16xf32>, vector<16x16xf32>, vector<16x16xf32> -> vector<16x16xf32>
    %cst_45 = arith.constant 2.500000e-01 : f32
    %50 = vector.broadcast %cst_45 : f32 to vector<16x16xf32>
    %51 = arith.mulf %49, %50 : vector<16x16xf32>
    %52 = arith.addf %51, %1 : vector<16x16xf32>
    %cst_46 = arith.constant dense<0xFF800000> : vector<16xf32>
    %53 = vector.multi_reduction <maximumf>, %52, %cst_46 [1] : vector<16x16xf32> to vector<16xf32>
    %54 = vector.shape_cast %53 : vector<16xf32> to vector<16x1xf32>
    %55 = vector.broadcast %54 : vector<16x1xf32> to vector<16x16xf32>
    %56 = arith.subf %52, %55 : vector<16x16xf32>
    %57 = math.exp %56 : vector<16x16xf32>
    %cst_47 = arith.constant dense<0.000000e+00> : vector<16xf32>
    %58 = vector.multi_reduction <add>, %57, %cst_47 [1] : vector<16x16xf32> to vector<16xf32>
    %59 = vector.shape_cast %58 : vector<16xf32> to vector<16x1xf32>
    %60 = tpu.reciprocal %59 {approx = true} : vector<16x1xf32> -> vector<16x1xf32>
    %61 = vector.broadcast %60 : vector<16x1xf32> to vector<16x16xf32>
    %62 = arith.mulf %57, %61 : vector<16x16xf32>
    %cst_48 = arith.constant dense<0.000000e+00> : vector<16x16xf32>
    %63 = tpu.matmul %62, %48, %cst_48 {dimension_numbers = #tpu.dot_dimension_numbers<[1], [0], [0], [1], [0, 0, 1, 1], [], []>} : vector<16x16xf32>, vector<16x16xf32>, vector<16x16xf32> -> vector<16x16xf32>
    %c0_49 = arith.constant 0 : index
    %c0_50 = arith.constant 0 : index
    %c0_51 = arith.constant 0 : index
    %c0_52 = arith.constant 0 : index
    %64 = vector.load %arg5[%c0_49, %c0_50, %c0_51, %c0_52] : memref<2x2x16x32xf32, #tpu.memory_space<vmem>>, vector<1x1x16x32xf32>
    %65 = vector.shape_cast %64 : vector<1x1x16x32xf32> to vector<16x32xf32>
    %cst_53 = arith.constant dense<0.000000e+00> : vector<16x32xf32>
    %66 = tpu.matmul %63, %65, %cst_53 {dimension_numbers = #tpu.dot_dimension_numbers<[1], [0], [0], [1], [0, 0, 1, 1], [], []>} : vector<16x16xf32>, vector<16x32xf32>, vector<16x32xf32> -> vector<16x32xf32>
    %c0_54 = arith.constant 0 : index
    %c1_55 = arith.constant 1 : index
    %c0_56 = arith.constant 0 : index
    %c0_57 = arith.constant 0 : index
    %c0_58 = arith.constant 0 : index
    %67 = vector.load %arg3[%c0_54, %c1_55, %c0_56, %c0_57, %c0_58] : memref<2x2x3x32x16xf32, #tpu.memory_space<vmem>>, vector<1x1x1x32x16xf32>
    %68 = vector.shape_cast %67 : vector<1x1x1x32x16xf32> to vector<32x16xf32>
    %cst_59 = arith.constant dense<0.000000e+00> : vector<16x16xf32>
    %69 = tpu.matmul %27, %68, %cst_59 {dimension_numbers = #tpu.dot_dimension_numbers<[1], [0], [0], [1], [0, 0, 1, 1], [], []>} : vector<16x32xf32>, vector<32x16xf32>, vector<16x16xf32> -> vector<16x16xf32>
    %c0_60 = arith.constant 0 : index
    %c1_61 = arith.constant 1 : index
    %c0_62 = arith.constant 0 : index
    %c0_63 = arith.constant 0 : index
    %c0_64 = arith.constant 0 : index
    %70 = vector.load %arg4[%c0_60, %c1_61, %c0_62, %c0_63, %c0_64] : memref<2x2x3x1x16xf32, #tpu.memory_space<vmem>>, vector<1x1x1x1x16xf32>
    %71 = vector.shape_cast %70 : vector<1x1x1x1x16xf32> to vector<1x16xf32>
    %72 = vector.broadcast %71 : vector<1x16xf32> to vector<16x16xf32>
    %73 = arith.addf %69, %72 : vector<16x16xf32>
    %c0_65 = arith.constant 0 : index
    %c1_66 = arith.constant 1 : index
    %c1_67 = arith.constant 1 : index
    %c0_68 = arith.constant 0 : index
    %c0_69 = arith.constant 0 : index
    %74 = vector.load %arg3[%c0_65, %c1_66, %c1_67, %c0_68, %c0_69] : memref<2x2x3x32x16xf32, #tpu.memory_space<vmem>>, vector<1x1x1x32x16xf32>
    %75 = vector.shape_cast %74 : vector<1x1x1x32x16xf32> to vector<32x16xf32>
    %cst_70 = arith.constant dense<0.000000e+00> : vector<16x16xf32>
    %76 = tpu.matmul %27, %75, %cst_70 {dimension_numbers = #tpu.dot_dimension_numbers<[1], [0], [0], [1], [0, 0, 1, 1], [], []>} : vector<16x32xf32>, vector<32x16xf32>, vector<16x16xf32> -> vector<16x16xf32>
    %c0_71 = arith.constant 0 : index
    %c1_72 = arith.constant 1 : index
    %c1_73 = arith.constant 1 : index
    %c0_74 = arith.constant 0 : index
    %c0_75 = arith.constant 0 : index
    %77 = vector.load %arg4[%c0_71, %c1_72, %c1_73, %c0_74, %c0_75] : memref<2x2x3x1x16xf32, #tpu.memory_space<vmem>>, vector<1x1x1x1x16xf32>
    %78 = vector.shape_cast %77 : vector<1x1x1x1x16xf32> to vector<1x16xf32>
    %79 = vector.broadcast %78 : vector<1x16xf32> to vector<16x16xf32>
    %80 = arith.addf %76, %79 : vector<16x16xf32>
    %c0_76 = arith.constant 0 : index
    %c1_77 = arith.constant 1 : index
    %c2_78 = arith.constant 2 : index
    %c0_79 = arith.constant 0 : index
    %c0_80 = arith.constant 0 : index
    %81 = vector.load %arg3[%c0_76, %c1_77, %c2_78, %c0_79, %c0_80] : memref<2x2x3x32x16xf32, #tpu.memory_space<vmem>>, vector<1x1x1x32x16xf32>
    %82 = vector.shape_cast %81 : vector<1x1x1x32x16xf32> to vector<32x16xf32>
    %cst_81 = arith.constant dense<0.000000e+00> : vector<16x16xf32>
    %83 = tpu.matmul %27, %82, %cst_81 {dimension_numbers = #tpu.dot_dimension_numbers<[1], [0], [0], [1], [0, 0, 1, 1], [], []>} : vector<16x32xf32>, vector<32x16xf32>, vector<16x16xf32> -> vector<16x16xf32>
    %c0_82 = arith.constant 0 : index
    %c1_83 = arith.constant 1 : index
    %c2_84 = arith.constant 2 : index
    %c0_85 = arith.constant 0 : index
    %c0_86 = arith.constant 0 : index
    %84 = vector.load %arg4[%c0_82, %c1_83, %c2_84, %c0_85, %c0_86] : memref<2x2x3x1x16xf32, #tpu.memory_space<vmem>>, vector<1x1x1x1x16xf32>
    %85 = vector.shape_cast %84 : vector<1x1x1x1x16xf32> to vector<1x16xf32>
    %86 = vector.broadcast %85 : vector<1x16xf32> to vector<16x16xf32>
    %87 = arith.addf %83, %86 : vector<16x16xf32>
    %cst_87 = arith.constant dense<0.000000e+00> : vector<16x16xf32>
    %88 = tpu.matmul %73, %80, %cst_87 {dimension_numbers = #tpu.dot_dimension_numbers<[1], [1], [0], [0], [0, 0, 1, 0], [], []>} : vector<16x16xf32>, vector<16x16xf32>, vector<16x16xf32> -> vector<16x16xf32>
    %cst_88 = arith.constant 2.500000e-01 : f32
    %89 = vector.broadcast %cst_88 : f32 to vector<16x16xf32>
    %90 = arith.mulf %88, %89 : vector<16x16xf32>
    %91 = arith.addf %90, %1 : vector<16x16xf32>
    %cst_89 = arith.constant dense<0xFF800000> : vector<16xf32>
    %92 = vector.multi_reduction <maximumf>, %91, %cst_89 [1] : vector<16x16xf32> to vector<16xf32>
    %93 = vector.shape_cast %92 : vector<16xf32> to vector<16x1xf32>
    %94 = vector.broadcast %93 : vector<16x1xf32> to vector<16x16xf32>
    %95 = arith.subf %91, %94 : vector<16x16xf32>
    %96 = math.exp %95 : vector<16x16xf32>
    %cst_90 = arith.constant dense<0.000000e+00> : vector<16xf32>
    %97 = vector.multi_reduction <add>, %96, %cst_90 [1] : vector<16x16xf32> to vector<16xf32>
    %98 = vector.shape_cast %97 : vector<16xf32> to vector<16x1xf32>
    %99 = tpu.reciprocal %98 {approx = true} : vector<16x1xf32> -> vector<16x1xf32>
    %100 = vector.broadcast %99 : vector<16x1xf32> to vector<16x16xf32>
    %101 = arith.mulf %96, %100 : vector<16x16xf32>
    %cst_91 = arith.constant dense<0.000000e+00> : vector<16x16xf32>
    %102 = tpu.matmul %101, %87, %cst_91 {dimension_numbers = #tpu.dot_dimension_numbers<[1], [0], [0], [1], [0, 0, 1, 1], [], []>} : vector<16x16xf32>, vector<16x16xf32>, vector<16x16xf32> -> vector<16x16xf32>
    %c0_92 = arith.constant 0 : index
    %c1_93 = arith.constant 1 : index
    %c0_94 = arith.constant 0 : index
    %c0_95 = arith.constant 0 : index
    %103 = vector.load %arg5[%c0_92, %c1_93, %c0_94, %c0_95] : memref<2x2x16x32xf32, #tpu.memory_space<vmem>>, vector<1x1x16x32xf32>
    %104 = vector.shape_cast %103 : vector<1x1x16x32xf32> to vector<16x32xf32>
    %cst_96 = arith.constant dense<0.000000e+00> : vector<16x32xf32>
    %105 = tpu.matmul %102, %104, %cst_96 {dimension_numbers = #tpu.dot_dimension_numbers<[1], [0], [0], [1], [0, 0, 1, 1], [], []>} : vector<16x16xf32>, vector<16x32xf32>, vector<16x32xf32> -> vector<16x32xf32>
    %106 = arith.addf %66, %105 : vector<16x32xf32>
    %c3 = arith.constant 3 : index
    %c0_97 = arith.constant 0 : index
    %c0_98 = arith.constant 0 : index
    %107 = vector.load %arg9[%c3, %c0_97, %c0_98] : memref<15x1x32xf32, #tpu.memory_space<vmem>>, vector<1x1x32xf32>
    %108 = vector.shape_cast %107 : vector<1x1x32xf32> to vector<1x32xf32>
    %109 = vector.broadcast %108 : vector<1x32xf32> to vector<16x32xf32>
    %110 = arith.addf %106, %109 : vector<16x32xf32>
    %111 = arith.addf %27, %110 : vector<16x32xf32>
    %c4 = arith.constant 4 : index
    %c0_99 = arith.constant 0 : index
    %c0_100 = arith.constant 0 : index
    %112 = vector.load %arg9[%c4, %c0_99, %c0_100] : memref<15x1x32xf32, #tpu.memory_space<vmem>>, vector<1x1x32xf32>
    %113 = vector.shape_cast %112 : vector<1x1x32xf32> to vector<1x32xf32>
    %c5 = arith.constant 5 : index
    %c0_101 = arith.constant 0 : index
    %c0_102 = arith.constant 0 : index
    %114 = vector.load %arg9[%c5, %c0_101, %c0_102] : memref<15x1x32xf32, #tpu.memory_space<vmem>>, vector<1x1x32xf32>
    %115 = vector.shape_cast %114 : vector<1x1x32xf32> to vector<1x32xf32>
    %cst_103 = arith.constant dense<0.000000e+00> : vector<16xf32>
    %116 = vector.multi_reduction <add>, %111, %cst_103 [1] : vector<16x32xf32> to vector<16xf32>
    %117 = vector.shape_cast %116 : vector<16xf32> to vector<16x1xf32>
    %cst_104 = arith.constant 3.200000e+01 : f32
    %118 = vector.broadcast %cst_104 : f32 to vector<16x1xf32>
    %119 = arith.divf %117, %118 : vector<16x1xf32>
    %120 = vector.broadcast %119 : vector<16x1xf32> to vector<16x32xf32>
    %121 = arith.subf %111, %120 : vector<16x32xf32>
    %122 = arith.mulf %121, %121 : vector<16x32xf32>
    %cst_105 = arith.constant dense<0.000000e+00> : vector<16xf32>
    %123 = vector.multi_reduction <add>, %122, %cst_105 [1] : vector<16x32xf32> to vector<16xf32>
    %124 = vector.shape_cast %123 : vector<16xf32> to vector<16x1xf32>
    %cst_106 = arith.constant 3.200000e+01 : f32
    %125 = vector.broadcast %cst_106 : f32 to vector<16x1xf32>
    %126 = arith.divf %124, %125 : vector<16x1xf32>
    %127 = vector.broadcast %119 : vector<16x1xf32> to vector<16x32xf32>
    %128 = arith.subf %111, %127 : vector<16x32xf32>
    %cst_107 = arith.constant 9.99999996E-13 : f32
    %129 = vector.broadcast %cst_107 : f32 to vector<16x1xf32>
    %130 = arith.addf %126, %129 : vector<16x1xf32>
    %131 = math.rsqrt %130 : vector<16x1xf32>
    %132 = vector.broadcast %131 : vector<16x1xf32> to vector<16x32xf32>
    %133 = arith.mulf %128, %132 : vector<16x32xf32>
    %134 = vector.broadcast %113 : vector<1x32xf32> to vector<16x32xf32>
    %135 = arith.mulf %133, %134 : vector<16x32xf32>
    %136 = vector.broadcast %115 : vector<1x32xf32> to vector<16x32xf32>
    %137 = arith.addf %135, %136 : vector<16x32xf32>
    %c0_108 = arith.constant 0 : index
    %c0_109 = arith.constant 0 : index
    %c0_110 = arith.constant 0 : index
    %138 = vector.load %arg6[%c0_108, %c0_109, %c0_110] : memref<2x32x64xf32, #tpu.memory_space<vmem>>, vector<1x32x64xf32>
    %139 = vector.shape_cast %138 : vector<1x32x64xf32> to vector<32x64xf32>
    %cst_111 = arith.constant dense<0.000000e+00> : vector<16x64xf32>
    %140 = tpu.matmul %137, %139, %cst_111 {dimension_numbers = #tpu.dot_dimension_numbers<[1], [0], [0], [1], [0, 0, 1, 1], [], []>} : vector<16x32xf32>, vector<32x64xf32>, vector<16x64xf32> -> vector<16x64xf32>
    %c0_112 = arith.constant 0 : index
    %c0_113 = arith.constant 0 : index
    %c0_114 = arith.constant 0 : index
    %141 = vector.load %arg7[%c0_112, %c0_113, %c0_114] : memref<2x1x64xf32, #tpu.memory_space<vmem>>, vector<1x1x64xf32>
    %142 = vector.shape_cast %141 : vector<1x1x64xf32> to vector<1x64xf32>
    %143 = vector.broadcast %142 : vector<1x64xf32> to vector<16x64xf32>
    %144 = arith.addf %140, %143 : vector<16x64xf32>
    %145 = arith.mulf %144, %144 : vector<16x64xf32>
    %146 = arith.mulf %144, %145 : vector<16x64xf32>
    %cst_115 = arith.constant 4.471500e-02 : f32
    %147 = vector.broadcast %cst_115 : f32 to vector<16x64xf32>
    %148 = arith.mulf %147, %146 : vector<16x64xf32>
    %149 = arith.addf %144, %148 : vector<16x64xf32>
    %cst_116 = arith.constant 0.797884583 : f32
    %150 = vector.broadcast %cst_116 : f32 to vector<16x64xf32>
    %151 = arith.mulf %150, %149 : vector<16x64xf32>
    %152 = math.tanh %151 : vector<16x64xf32>
    %cst_117 = arith.constant 1.000000e+00 : f32
    %153 = vector.broadcast %cst_117 : f32 to vector<16x64xf32>
    %154 = arith.addf %153, %152 : vector<16x64xf32>
    %cst_118 = arith.constant 5.000000e-01 : f32
    %155 = vector.broadcast %cst_118 : f32 to vector<16x64xf32>
    %156 = arith.mulf %155, %154 : vector<16x64xf32>
    %157 = arith.mulf %144, %156 : vector<16x64xf32>
    %c0_119 = arith.constant 0 : index
    %c0_120 = arith.constant 0 : index
    %c0_121 = arith.constant 0 : index
    %158 = vector.load %arg8[%c0_119, %c0_120, %c0_121] : memref<2x64x32xf32, #tpu.memory_space<vmem>>, vector<1x64x32xf32>
    %159 = vector.shape_cast %158 : vector<1x64x32xf32> to vector<64x32xf32>
    %cst_122 = arith.constant dense<0.000000e+00> : vector<16x32xf32>
    %160 = tpu.matmul %157, %159, %cst_122 {dimension_numbers = #tpu.dot_dimension_numbers<[1], [0], [0], [1], [0, 0, 1, 1], [], []>} : vector<16x64xf32>, vector<64x32xf32>, vector<16x32xf32> -> vector<16x32xf32>
    %c6 = arith.constant 6 : index
    %c0_123 = arith.constant 0 : index
    %c0_124 = arith.constant 0 : index
    %161 = vector.load %arg9[%c6, %c0_123, %c0_124] : memref<15x1x32xf32, #tpu.memory_space<vmem>>, vector<1x1x32xf32>
    %162 = vector.shape_cast %161 : vector<1x1x32xf32> to vector<1x32xf32>
    %163 = vector.broadcast %162 : vector<1x32xf32> to vector<16x32xf32>
    %164 = arith.addf %160, %163 : vector<16x32xf32>
    %165 = arith.addf %137, %164 : vector<16x32xf32>
    %c7 = arith.constant 7 : index
    %c0_125 = arith.constant 0 : index
    %c0_126 = arith.constant 0 : index
    %166 = vector.load %arg9[%c7, %c0_125, %c0_126] : memref<15x1x32xf32, #tpu.memory_space<vmem>>, vector<1x1x32xf32>
    %167 = vector.shape_cast %166 : vector<1x1x32xf32> to vector<1x32xf32>
    %c8 = arith.constant 8 : index
    %c0_127 = arith.constant 0 : index
    %c0_128 = arith.constant 0 : index
    %168 = vector.load %arg9[%c8, %c0_127, %c0_128] : memref<15x1x32xf32, #tpu.memory_space<vmem>>, vector<1x1x32xf32>
    %169 = vector.shape_cast %168 : vector<1x1x32xf32> to vector<1x32xf32>
    %cst_129 = arith.constant dense<0.000000e+00> : vector<16xf32>
    %170 = vector.multi_reduction <add>, %165, %cst_129 [1] : vector<16x32xf32> to vector<16xf32>
    %171 = vector.shape_cast %170 : vector<16xf32> to vector<16x1xf32>
    %cst_130 = arith.constant 3.200000e+01 : f32
    %172 = vector.broadcast %cst_130 : f32 to vector<16x1xf32>
    %173 = arith.divf %171, %172 : vector<16x1xf32>
    %174 = vector.broadcast %173 : vector<16x1xf32> to vector<16x32xf32>
    %175 = arith.subf %165, %174 : vector<16x32xf32>
    %176 = arith.mulf %175, %175 : vector<16x32xf32>
    %cst_131 = arith.constant dense<0.000000e+00> : vector<16xf32>
    %177 = vector.multi_reduction <add>, %176, %cst_131 [1] : vector<16x32xf32> to vector<16xf32>
    %178 = vector.shape_cast %177 : vector<16xf32> to vector<16x1xf32>
    %cst_132 = arith.constant 3.200000e+01 : f32
    %179 = vector.broadcast %cst_132 : f32 to vector<16x1xf32>
    %180 = arith.divf %178, %179 : vector<16x1xf32>
    %181 = vector.broadcast %173 : vector<16x1xf32> to vector<16x32xf32>
    %182 = arith.subf %165, %181 : vector<16x32xf32>
    %cst_133 = arith.constant 9.99999996E-13 : f32
    %183 = vector.broadcast %cst_133 : f32 to vector<16x1xf32>
    %184 = arith.addf %180, %183 : vector<16x1xf32>
    %185 = math.rsqrt %184 : vector<16x1xf32>
    %186 = vector.broadcast %185 : vector<16x1xf32> to vector<16x32xf32>
    %187 = arith.mulf %182, %186 : vector<16x32xf32>
    %188 = vector.broadcast %167 : vector<1x32xf32> to vector<16x32xf32>
    %189 = arith.mulf %187, %188 : vector<16x32xf32>
    %190 = vector.broadcast %169 : vector<1x32xf32> to vector<16x32xf32>
    %191 = arith.addf %189, %190 : vector<16x32xf32>
    %c1_134 = arith.constant 1 : index
    %c0_135 = arith.constant 0 : index
    %c0_136 = arith.constant 0 : index
    %c0_137 = arith.constant 0 : index
    %c0_138 = arith.constant 0 : index
    %192 = vector.load %arg3[%c1_134, %c0_135, %c0_136, %c0_137, %c0_138] : memref<2x2x3x32x16xf32, #tpu.memory_space<vmem>>, vector<1x1x1x32x16xf32>
    %193 = vector.shape_cast %192 : vector<1x1x1x32x16xf32> to vector<32x16xf32>
    %cst_139 = arith.constant dense<0.000000e+00> : vector<16x16xf32>
    %194 = tpu.matmul %191, %193, %cst_139 {dimension_numbers = #tpu.dot_dimension_numbers<[1], [0], [0], [1], [0, 0, 1, 1], [], []>} : vector<16x32xf32>, vector<32x16xf32>, vector<16x16xf32> -> vector<16x16xf32>
    %c1_140 = arith.constant 1 : index
    %c0_141 = arith.constant 0 : index
    %c0_142 = arith.constant 0 : index
    %c0_143 = arith.constant 0 : index
    %c0_144 = arith.constant 0 : index
    %195 = vector.load %arg4[%c1_140, %c0_141, %c0_142, %c0_143, %c0_144] : memref<2x2x3x1x16xf32, #tpu.memory_space<vmem>>, vector<1x1x1x1x16xf32>
    %196 = vector.shape_cast %195 : vector<1x1x1x1x16xf32> to vector<1x16xf32>
    %197 = vector.broadcast %196 : vector<1x16xf32> to vector<16x16xf32>
    %198 = arith.addf %194, %197 : vector<16x16xf32>
    %c1_145 = arith.constant 1 : index
    %c0_146 = arith.constant 0 : index
    %c1_147 = arith.constant 1 : index
    %c0_148 = arith.constant 0 : index
    %c0_149 = arith.constant 0 : index
    %199 = vector.load %arg3[%c1_145, %c0_146, %c1_147, %c0_148, %c0_149] : memref<2x2x3x32x16xf32, #tpu.memory_space<vmem>>, vector<1x1x1x32x16xf32>
    %200 = vector.shape_cast %199 : vector<1x1x1x32x16xf32> to vector<32x16xf32>
    %cst_150 = arith.constant dense<0.000000e+00> : vector<16x16xf32>
    %201 = tpu.matmul %191, %200, %cst_150 {dimension_numbers = #tpu.dot_dimension_numbers<[1], [0], [0], [1], [0, 0, 1, 1], [], []>} : vector<16x32xf32>, vector<32x16xf32>, vector<16x16xf32> -> vector<16x16xf32>
    %c1_151 = arith.constant 1 : index
    %c0_152 = arith.constant 0 : index
    %c1_153 = arith.constant 1 : index
    %c0_154 = arith.constant 0 : index
    %c0_155 = arith.constant 0 : index
    %202 = vector.load %arg4[%c1_151, %c0_152, %c1_153, %c0_154, %c0_155] : memref<2x2x3x1x16xf32, #tpu.memory_space<vmem>>, vector<1x1x1x1x16xf32>
    %203 = vector.shape_cast %202 : vector<1x1x1x1x16xf32> to vector<1x16xf32>
    %204 = vector.broadcast %203 : vector<1x16xf32> to vector<16x16xf32>
    %205 = arith.addf %201, %204 : vector<16x16xf32>
    %c1_156 = arith.constant 1 : index
    %c0_157 = arith.constant 0 : index
    %c2_158 = arith.constant 2 : index
    %c0_159 = arith.constant 0 : index
    %c0_160 = arith.constant 0 : index
    %206 = vector.load %arg3[%c1_156, %c0_157, %c2_158, %c0_159, %c0_160] : memref<2x2x3x32x16xf32, #tpu.memory_space<vmem>>, vector<1x1x1x32x16xf32>
    %207 = vector.shape_cast %206 : vector<1x1x1x32x16xf32> to vector<32x16xf32>
    %cst_161 = arith.constant dense<0.000000e+00> : vector<16x16xf32>
    %208 = tpu.matmul %191, %207, %cst_161 {dimension_numbers = #tpu.dot_dimension_numbers<[1], [0], [0], [1], [0, 0, 1, 1], [], []>} : vector<16x32xf32>, vector<32x16xf32>, vector<16x16xf32> -> vector<16x16xf32>
    %c1_162 = arith.constant 1 : index
    %c0_163 = arith.constant 0 : index
    %c2_164 = arith.constant 2 : index
    %c0_165 = arith.constant 0 : index
    %c0_166 = arith.constant 0 : index
    %209 = vector.load %arg4[%c1_162, %c0_163, %c2_164, %c0_165, %c0_166] : memref<2x2x3x1x16xf32, #tpu.memory_space<vmem>>, vector<1x1x1x1x16xf32>
    %210 = vector.shape_cast %209 : vector<1x1x1x1x16xf32> to vector<1x16xf32>
    %211 = vector.broadcast %210 : vector<1x16xf32> to vector<16x16xf32>
    %212 = arith.addf %208, %211 : vector<16x16xf32>
    %cst_167 = arith.constant dense<0.000000e+00> : vector<16x16xf32>
    %213 = tpu.matmul %198, %205, %cst_167 {dimension_numbers = #tpu.dot_dimension_numbers<[1], [1], [0], [0], [0, 0, 1, 0], [], []>} : vector<16x16xf32>, vector<16x16xf32>, vector<16x16xf32> -> vector<16x16xf32>
    %cst_168 = arith.constant 2.500000e-01 : f32
    %214 = vector.broadcast %cst_168 : f32 to vector<16x16xf32>
    %215 = arith.mulf %213, %214 : vector<16x16xf32>
    %216 = arith.addf %215, %1 : vector<16x16xf32>
    %cst_169 = arith.constant dense<0xFF800000> : vector<16xf32>
    %217 = vector.multi_reduction <maximumf>, %216, %cst_169 [1] : vector<16x16xf32> to vector<16xf32>
    %218 = vector.shape_cast %217 : vector<16xf32> to vector<16x1xf32>
    %219 = vector.broadcast %218 : vector<16x1xf32> to vector<16x16xf32>
    %220 = arith.subf %216, %219 : vector<16x16xf32>
    %221 = math.exp %220 : vector<16x16xf32>
    %cst_170 = arith.constant dense<0.000000e+00> : vector<16xf32>
    %222 = vector.multi_reduction <add>, %221, %cst_170 [1] : vector<16x16xf32> to vector<16xf32>
    %223 = vector.shape_cast %222 : vector<16xf32> to vector<16x1xf32>
    %224 = tpu.reciprocal %223 {approx = true} : vector<16x1xf32> -> vector<16x1xf32>
    %225 = vector.broadcast %224 : vector<16x1xf32> to vector<16x16xf32>
    %226 = arith.mulf %221, %225 : vector<16x16xf32>
    %cst_171 = arith.constant dense<0.000000e+00> : vector<16x16xf32>
    %227 = tpu.matmul %226, %212, %cst_171 {dimension_numbers = #tpu.dot_dimension_numbers<[1], [0], [0], [1], [0, 0, 1, 1], [], []>} : vector<16x16xf32>, vector<16x16xf32>, vector<16x16xf32> -> vector<16x16xf32>
    %c1_172 = arith.constant 1 : index
    %c0_173 = arith.constant 0 : index
    %c0_174 = arith.constant 0 : index
    %c0_175 = arith.constant 0 : index
    %228 = vector.load %arg5[%c1_172, %c0_173, %c0_174, %c0_175] : memref<2x2x16x32xf32, #tpu.memory_space<vmem>>, vector<1x1x16x32xf32>
    %229 = vector.shape_cast %228 : vector<1x1x16x32xf32> to vector<16x32xf32>
    %cst_176 = arith.constant dense<0.000000e+00> : vector<16x32xf32>
    %230 = tpu.matmul %227, %229, %cst_176 {dimension_numbers = #tpu.dot_dimension_numbers<[1], [0], [0], [1], [0, 0, 1, 1], [], []>} : vector<16x16xf32>, vector<16x32xf32>, vector<16x32xf32> -> vector<16x32xf32>
    %c1_177 = arith.constant 1 : index
    %c1_178 = arith.constant 1 : index
    %c0_179 = arith.constant 0 : index
    %c0_180 = arith.constant 0 : index
    %c0_181 = arith.constant 0 : index
    %231 = vector.load %arg3[%c1_177, %c1_178, %c0_179, %c0_180, %c0_181] : memref<2x2x3x32x16xf32, #tpu.memory_space<vmem>>, vector<1x1x1x32x16xf32>
    %232 = vector.shape_cast %231 : vector<1x1x1x32x16xf32> to vector<32x16xf32>
    %cst_182 = arith.constant dense<0.000000e+00> : vector<16x16xf32>
    %233 = tpu.matmul %191, %232, %cst_182 {dimension_numbers = #tpu.dot_dimension_numbers<[1], [0], [0], [1], [0, 0, 1, 1], [], []>} : vector<16x32xf32>, vector<32x16xf32>, vector<16x16xf32> -> vector<16x16xf32>
    %c1_183 = arith.constant 1 : index
    %c1_184 = arith.constant 1 : index
    %c0_185 = arith.constant 0 : index
    %c0_186 = arith.constant 0 : index
    %c0_187 = arith.constant 0 : index
    %234 = vector.load %arg4[%c1_183, %c1_184, %c0_185, %c0_186, %c0_187] : memref<2x2x3x1x16xf32, #tpu.memory_space<vmem>>, vector<1x1x1x1x16xf32>
    %235 = vector.shape_cast %234 : vector<1x1x1x1x16xf32> to vector<1x16xf32>
    %236 = vector.broadcast %235 : vector<1x16xf32> to vector<16x16xf32>
    %237 = arith.addf %233, %236 : vector<16x16xf32>
    %c1_188 = arith.constant 1 : index
    %c1_189 = arith.constant 1 : index
    %c1_190 = arith.constant 1 : index
    %c0_191 = arith.constant 0 : index
    %c0_192 = arith.constant 0 : index
    %238 = vector.load %arg3[%c1_188, %c1_189, %c1_190, %c0_191, %c0_192] : memref<2x2x3x32x16xf32, #tpu.memory_space<vmem>>, vector<1x1x1x32x16xf32>
    %239 = vector.shape_cast %238 : vector<1x1x1x32x16xf32> to vector<32x16xf32>
    %cst_193 = arith.constant dense<0.000000e+00> : vector<16x16xf32>
    %240 = tpu.matmul %191, %239, %cst_193 {dimension_numbers = #tpu.dot_dimension_numbers<[1], [0], [0], [1], [0, 0, 1, 1], [], []>} : vector<16x32xf32>, vector<32x16xf32>, vector<16x16xf32> -> vector<16x16xf32>
    %c1_194 = arith.constant 1 : index
    %c1_195 = arith.constant 1 : index
    %c1_196 = arith.constant 1 : index
    %c0_197 = arith.constant 0 : index
    %c0_198 = arith.constant 0 : index
    %241 = vector.load %arg4[%c1_194, %c1_195, %c1_196, %c0_197, %c0_198] : memref<2x2x3x1x16xf32, #tpu.memory_space<vmem>>, vector<1x1x1x1x16xf32>
    %242 = vector.shape_cast %241 : vector<1x1x1x1x16xf32> to vector<1x16xf32>
    %243 = vector.broadcast %242 : vector<1x16xf32> to vector<16x16xf32>
    %244 = arith.addf %240, %243 : vector<16x16xf32>
    %c1_199 = arith.constant 1 : index
    %c1_200 = arith.constant 1 : index
    %c2_201 = arith.constant 2 : index
    %c0_202 = arith.constant 0 : index
    %c0_203 = arith.constant 0 : index
    %245 = vector.load %arg3[%c1_199, %c1_200, %c2_201, %c0_202, %c0_203] : memref<2x2x3x32x16xf32, #tpu.memory_space<vmem>>, vector<1x1x1x32x16xf32>
    %246 = vector.shape_cast %245 : vector<1x1x1x32x16xf32> to vector<32x16xf32>
    %cst_204 = arith.constant dense<0.000000e+00> : vector<16x16xf32>
    %247 = tpu.matmul %191, %246, %cst_204 {dimension_numbers = #tpu.dot_dimension_numbers<[1], [0], [0], [1], [0, 0, 1, 1], [], []>} : vector<16x32xf32>, vector<32x16xf32>, vector<16x16xf32> -> vector<16x16xf32>
    %c1_205 = arith.constant 1 : index
    %c1_206 = arith.constant 1 : index
    %c2_207 = arith.constant 2 : index
    %c0_208 = arith.constant 0 : index
    %c0_209 = arith.constant 0 : index
    %248 = vector.load %arg4[%c1_205, %c1_206, %c2_207, %c0_208, %c0_209] : memref<2x2x3x1x16xf32, #tpu.memory_space<vmem>>, vector<1x1x1x1x16xf32>
    %249 = vector.shape_cast %248 : vector<1x1x1x1x16xf32> to vector<1x16xf32>
    %250 = vector.broadcast %249 : vector<1x16xf32> to vector<16x16xf32>
    %251 = arith.addf %247, %250 : vector<16x16xf32>
    %cst_210 = arith.constant dense<0.000000e+00> : vector<16x16xf32>
    %252 = tpu.matmul %237, %244, %cst_210 {dimension_numbers = #tpu.dot_dimension_numbers<[1], [1], [0], [0], [0, 0, 1, 0], [], []>} : vector<16x16xf32>, vector<16x16xf32>, vector<16x16xf32> -> vector<16x16xf32>
    %cst_211 = arith.constant 2.500000e-01 : f32
    %253 = vector.broadcast %cst_211 : f32 to vector<16x16xf32>
    %254 = arith.mulf %252, %253 : vector<16x16xf32>
    %255 = arith.addf %254, %1 : vector<16x16xf32>
    %cst_212 = arith.constant dense<0xFF800000> : vector<16xf32>
    %256 = vector.multi_reduction <maximumf>, %255, %cst_212 [1] : vector<16x16xf32> to vector<16xf32>
    %257 = vector.shape_cast %256 : vector<16xf32> to vector<16x1xf32>
    %258 = vector.broadcast %257 : vector<16x1xf32> to vector<16x16xf32>
    %259 = arith.subf %255, %258 : vector<16x16xf32>
    %260 = math.exp %259 : vector<16x16xf32>
    %cst_213 = arith.constant dense<0.000000e+00> : vector<16xf32>
    %261 = vector.multi_reduction <add>, %260, %cst_213 [1] : vector<16x16xf32> to vector<16xf32>
    %262 = vector.shape_cast %261 : vector<16xf32> to vector<16x1xf32>
    %263 = tpu.reciprocal %262 {approx = true} : vector<16x1xf32> -> vector<16x1xf32>
    %264 = vector.broadcast %263 : vector<16x1xf32> to vector<16x16xf32>
    %265 = arith.mulf %260, %264 : vector<16x16xf32>
    %cst_214 = arith.constant dense<0.000000e+00> : vector<16x16xf32>
    %266 = tpu.matmul %265, %251, %cst_214 {dimension_numbers = #tpu.dot_dimension_numbers<[1], [0], [0], [1], [0, 0, 1, 1], [], []>} : vector<16x16xf32>, vector<16x16xf32>, vector<16x16xf32> -> vector<16x16xf32>
    %c1_215 = arith.constant 1 : index
    %c1_216 = arith.constant 1 : index
    %c0_217 = arith.constant 0 : index
    %c0_218 = arith.constant 0 : index
    %267 = vector.load %arg5[%c1_215, %c1_216, %c0_217, %c0_218] : memref<2x2x16x32xf32, #tpu.memory_space<vmem>>, vector<1x1x16x32xf32>
    %268 = vector.shape_cast %267 : vector<1x1x16x32xf32> to vector<16x32xf32>
    %cst_219 = arith.constant dense<0.000000e+00> : vector<16x32xf32>
    %269 = tpu.matmul %266, %268, %cst_219 {dimension_numbers = #tpu.dot_dimension_numbers<[1], [0], [0], [1], [0, 0, 1, 1], [], []>} : vector<16x16xf32>, vector<16x32xf32>, vector<16x32xf32> -> vector<16x32xf32>
    %270 = arith.addf %230, %269 : vector<16x32xf32>
    %c9 = arith.constant 9 : index
    %c0_220 = arith.constant 0 : index
    %c0_221 = arith.constant 0 : index
    %271 = vector.load %arg9[%c9, %c0_220, %c0_221] : memref<15x1x32xf32, #tpu.memory_space<vmem>>, vector<1x1x32xf32>
    %272 = vector.shape_cast %271 : vector<1x1x32xf32> to vector<1x32xf32>
    %273 = vector.broadcast %272 : vector<1x32xf32> to vector<16x32xf32>
    %274 = arith.addf %270, %273 : vector<16x32xf32>
    %275 = arith.addf %191, %274 : vector<16x32xf32>
    %c10 = arith.constant 10 : index
    %c0_222 = arith.constant 0 : index
    %c0_223 = arith.constant 0 : index
    %276 = vector.load %arg9[%c10, %c0_222, %c0_223] : memref<15x1x32xf32, #tpu.memory_space<vmem>>, vector<1x1x32xf32>
    %277 = vector.shape_cast %276 : vector<1x1x32xf32> to vector<1x32xf32>
    %c11 = arith.constant 11 : index
    %c0_224 = arith.constant 0 : index
    %c0_225 = arith.constant 0 : index
    %278 = vector.load %arg9[%c11, %c0_224, %c0_225] : memref<15x1x32xf32, #tpu.memory_space<vmem>>, vector<1x1x32xf32>
    %279 = vector.shape_cast %278 : vector<1x1x32xf32> to vector<1x32xf32>
    %cst_226 = arith.constant dense<0.000000e+00> : vector<16xf32>
    %280 = vector.multi_reduction <add>, %275, %cst_226 [1] : vector<16x32xf32> to vector<16xf32>
    %281 = vector.shape_cast %280 : vector<16xf32> to vector<16x1xf32>
    %cst_227 = arith.constant 3.200000e+01 : f32
    %282 = vector.broadcast %cst_227 : f32 to vector<16x1xf32>
    %283 = arith.divf %281, %282 : vector<16x1xf32>
    %284 = vector.broadcast %283 : vector<16x1xf32> to vector<16x32xf32>
    %285 = arith.subf %275, %284 : vector<16x32xf32>
    %286 = arith.mulf %285, %285 : vector<16x32xf32>
    %cst_228 = arith.constant dense<0.000000e+00> : vector<16xf32>
    %287 = vector.multi_reduction <add>, %286, %cst_228 [1] : vector<16x32xf32> to vector<16xf32>
    %288 = vector.shape_cast %287 : vector<16xf32> to vector<16x1xf32>
    %cst_229 = arith.constant 3.200000e+01 : f32
    %289 = vector.broadcast %cst_229 : f32 to vector<16x1xf32>
    %290 = arith.divf %288, %289 : vector<16x1xf32>
    %291 = vector.broadcast %283 : vector<16x1xf32> to vector<16x32xf32>
    %292 = arith.subf %275, %291 : vector<16x32xf32>
    %cst_230 = arith.constant 9.99999996E-13 : f32
    %293 = vector.broadcast %cst_230 : f32 to vector<16x1xf32>
    %294 = arith.addf %290, %293 : vector<16x1xf32>
    %295 = math.rsqrt %294 : vector<16x1xf32>
    %296 = vector.broadcast %295 : vector<16x1xf32> to vector<16x32xf32>
    %297 = arith.mulf %292, %296 : vector<16x32xf32>
    %298 = vector.broadcast %277 : vector<1x32xf32> to vector<16x32xf32>
    %299 = arith.mulf %297, %298 : vector<16x32xf32>
    %300 = vector.broadcast %279 : vector<1x32xf32> to vector<16x32xf32>
    %301 = arith.addf %299, %300 : vector<16x32xf32>
    %c1_231 = arith.constant 1 : index
    %c0_232 = arith.constant 0 : index
    %c0_233 = arith.constant 0 : index
    %302 = vector.load %arg6[%c1_231, %c0_232, %c0_233] : memref<2x32x64xf32, #tpu.memory_space<vmem>>, vector<1x32x64xf32>
    %303 = vector.shape_cast %302 : vector<1x32x64xf32> to vector<32x64xf32>
    %cst_234 = arith.constant dense<0.000000e+00> : vector<16x64xf32>
    %304 = tpu.matmul %301, %303, %cst_234 {dimension_numbers = #tpu.dot_dimension_numbers<[1], [0], [0], [1], [0, 0, 1, 1], [], []>} : vector<16x32xf32>, vector<32x64xf32>, vector<16x64xf32> -> vector<16x64xf32>
    %c1_235 = arith.constant 1 : index
    %c0_236 = arith.constant 0 : index
    %c0_237 = arith.constant 0 : index
    %305 = vector.load %arg7[%c1_235, %c0_236, %c0_237] : memref<2x1x64xf32, #tpu.memory_space<vmem>>, vector<1x1x64xf32>
    %306 = vector.shape_cast %305 : vector<1x1x64xf32> to vector<1x64xf32>
    %307 = vector.broadcast %306 : vector<1x64xf32> to vector<16x64xf32>
    %308 = arith.addf %304, %307 : vector<16x64xf32>
    %309 = arith.mulf %308, %308 : vector<16x64xf32>
    %310 = arith.mulf %308, %309 : vector<16x64xf32>
    %cst_238 = arith.constant 4.471500e-02 : f32
    %311 = vector.broadcast %cst_238 : f32 to vector<16x64xf32>
    %312 = arith.mulf %311, %310 : vector<16x64xf32>
    %313 = arith.addf %308, %312 : vector<16x64xf32>
    %cst_239 = arith.constant 0.797884583 : f32
    %314 = vector.broadcast %cst_239 : f32 to vector<16x64xf32>
    %315 = arith.mulf %314, %313 : vector<16x64xf32>
    %316 = math.tanh %315 : vector<16x64xf32>
    %cst_240 = arith.constant 1.000000e+00 : f32
    %317 = vector.broadcast %cst_240 : f32 to vector<16x64xf32>
    %318 = arith.addf %317, %316 : vector<16x64xf32>
    %cst_241 = arith.constant 5.000000e-01 : f32
    %319 = vector.broadcast %cst_241 : f32 to vector<16x64xf32>
    %320 = arith.mulf %319, %318 : vector<16x64xf32>
    %321 = arith.mulf %308, %320 : vector<16x64xf32>
    %c1_242 = arith.constant 1 : index
    %c0_243 = arith.constant 0 : index
    %c0_244 = arith.constant 0 : index
    %322 = vector.load %arg8[%c1_242, %c0_243, %c0_244] : memref<2x64x32xf32, #tpu.memory_space<vmem>>, vector<1x64x32xf32>
    %323 = vector.shape_cast %322 : vector<1x64x32xf32> to vector<64x32xf32>
    %cst_245 = arith.constant dense<0.000000e+00> : vector<16x32xf32>
    %324 = tpu.matmul %321, %323, %cst_245 {dimension_numbers = #tpu.dot_dimension_numbers<[1], [0], [0], [1], [0, 0, 1, 1], [], []>} : vector<16x64xf32>, vector<64x32xf32>, vector<16x32xf32> -> vector<16x32xf32>
    %c12 = arith.constant 12 : index
    %c0_246 = arith.constant 0 : index
    %c0_247 = arith.constant 0 : index
    %325 = vector.load %arg9[%c12, %c0_246, %c0_247] : memref<15x1x32xf32, #tpu.memory_space<vmem>>, vector<1x1x32xf32>
    %326 = vector.shape_cast %325 : vector<1x1x32xf32> to vector<1x32xf32>
    %327 = vector.broadcast %326 : vector<1x32xf32> to vector<16x32xf32>
    %328 = arith.addf %324, %327 : vector<16x32xf32>
    %329 = arith.addf %301, %328 : vector<16x32xf32>
    %c13 = arith.constant 13 : index
    %c0_248 = arith.constant 0 : index
    %c0_249 = arith.constant 0 : index
    %330 = vector.load %arg9[%c13, %c0_248, %c0_249] : memref<15x1x32xf32, #tpu.memory_space<vmem>>, vector<1x1x32xf32>
    %331 = vector.shape_cast %330 : vector<1x1x32xf32> to vector<1x32xf32>
    %c14 = arith.constant 14 : index
    %c0_250 = arith.constant 0 : index
    %c0_251 = arith.constant 0 : index
    %332 = vector.load %arg9[%c14, %c0_250, %c0_251] : memref<15x1x32xf32, #tpu.memory_space<vmem>>, vector<1x1x32xf32>
    %333 = vector.shape_cast %332 : vector<1x1x32xf32> to vector<1x32xf32>
    %cst_252 = arith.constant dense<0.000000e+00> : vector<16xf32>
    %334 = vector.multi_reduction <add>, %329, %cst_252 [1] : vector<16x32xf32> to vector<16xf32>
    %335 = vector.shape_cast %334 : vector<16xf32> to vector<16x1xf32>
    %cst_253 = arith.constant 3.200000e+01 : f32
    %336 = vector.broadcast %cst_253 : f32 to vector<16x1xf32>
    %337 = arith.divf %335, %336 : vector<16x1xf32>
    %338 = vector.broadcast %337 : vector<16x1xf32> to vector<16x32xf32>
    %339 = arith.subf %329, %338 : vector<16x32xf32>
    %340 = arith.mulf %339, %339 : vector<16x32xf32>
    %cst_254 = arith.constant dense<0.000000e+00> : vector<16xf32>
    %341 = vector.multi_reduction <add>, %340, %cst_254 [1] : vector<16x32xf32> to vector<16xf32>
    %342 = vector.shape_cast %341 : vector<16xf32> to vector<16x1xf32>
    %cst_255 = arith.constant 3.200000e+01 : f32
    %343 = vector.broadcast %cst_255 : f32 to vector<16x1xf32>
    %344 = arith.divf %342, %343 : vector<16x1xf32>
    %345 = vector.broadcast %337 : vector<16x1xf32> to vector<16x32xf32>
    %346 = arith.subf %329, %345 : vector<16x32xf32>
    %cst_256 = arith.constant 9.99999996E-13 : f32
    %347 = vector.broadcast %cst_256 : f32 to vector<16x1xf32>
    %348 = arith.addf %344, %347 : vector<16x1xf32>
    %349 = math.rsqrt %348 : vector<16x1xf32>
    %350 = vector.broadcast %349 : vector<16x1xf32> to vector<16x32xf32>
    %351 = arith.mulf %346, %350 : vector<16x32xf32>
    %352 = vector.broadcast %331 : vector<1x32xf32> to vector<16x32xf32>
    %353 = arith.mulf %351, %352 : vector<16x32xf32>
    %354 = vector.broadcast %333 : vector<1x32xf32> to vector<16x32xf32>
    %355 = arith.addf %353, %354 : vector<16x32xf32>
    %c0_257 = arith.constant 0 : index
    %c0_258 = arith.constant 0 : index
    %356 = vector.load %arg10[%c0_257, %c0_258] : memref<32x32xf32, #tpu.memory_space<vmem>>, vector<32x32xf32>
    %cst_259 = arith.constant dense<0.000000e+00> : vector<16x32xf32>
    %357 = tpu.matmul %355, %356, %cst_259 {dimension_numbers = #tpu.dot_dimension_numbers<[1], [0], [0], [1], [0, 0, 1, 1], [], []>} : vector<16x32xf32>, vector<32x32xf32>, vector<16x32xf32> -> vector<16x32xf32>
    %c2_260 = arith.constant 2 : index
    %c0_261 = arith.constant 0 : index
    %c0_262 = arith.constant 0 : index
    %358 = vector.load %arg9[%c2_260, %c0_261, %c0_262] : memref<15x1x32xf32, #tpu.memory_space<vmem>>, vector<1x1x32xf32>
    %359 = vector.shape_cast %358 : vector<1x1x32xf32> to vector<1x32xf32>
    %360 = vector.broadcast %359 : vector<1x32xf32> to vector<16x32xf32>
    %361 = arith.addf %357, %360 : vector<16x32xf32>
    %cst_263 = arith.constant 0.000000e+00 : f32
    %362 = vector.broadcast %cst_263 : f32 to vector<16x32xf32>
    %363 = arith.maximumf %361, %362 : vector<16x32xf32>
    %c0_264 = arith.constant 0 : index
    %c0_265 = arith.constant 0 : index
    %c0_266 = arith.constant 0 : index
    %364 = vector.load %arg11[%c0_264, %c0_265, %c0_266] : memref<2x32x128xf32, #tpu.memory_space<vmem>>, vector<1x32x128xf32>
    %365 = vector.shape_cast %364 : vector<1x32x128xf32> to vector<32x128xf32>
    %cst_267 = arith.constant dense<0.000000e+00> : vector<16x128xf32>
    %366 = tpu.matmul %363, %365, %cst_267 {dimension_numbers = #tpu.dot_dimension_numbers<[1], [0], [0], [1], [0, 0, 1, 1], [], []>} : vector<16x32xf32>, vector<32x128xf32>, vector<16x128xf32> -> vector<16x128xf32>
    %c0_268 = arith.constant 0 : index
    %c0_269 = arith.constant 0 : index
    %c0_270 = arith.constant 0 : index
    %367 = vector.load %arg12[%c0_268, %c0_269, %c0_270] : memref<2x1x128xf32, #tpu.memory_space<vmem>>, vector<1x1x128xf32>
    %368 = vector.shape_cast %367 : vector<1x1x128xf32> to vector<1x128xf32>
    %369 = vector.broadcast %368 : vector<1x128xf32> to vector<16x128xf32>
    %370 = arith.addf %366, %369 : vector<16x128xf32>
    %c0_271 = arith.constant 0 : index
    %c0_272 = arith.constant 0 : index
    %371 = vector.load %arg13[%c0_271, %c0_272] : memref<16x128xf32, #tpu.memory_space<vmem>>, vector<16x128xf32>
    tpu.vector_store %arg13[%c0_271, %c0_272], %370 {strides = array<i32>} : memref<16x128xf32, #tpu.memory_space<vmem>>, vector<16x128xf32>,
    %c1_273 = arith.constant 1 : index
    %c0_274 = arith.constant 0 : index
    %c0_275 = arith.constant 0 : index
    %372 = vector.load %arg11[%c1_273, %c0_274, %c0_275] : memref<2x32x128xf32, #tpu.memory_space<vmem>>, vector<1x32x128xf32>
    %373 = vector.shape_cast %372 : vector<1x32x128xf32> to vector<32x128xf32>
    %cst_276 = arith.constant dense<0.000000e+00> : vector<16x128xf32>
    %374 = tpu.matmul %355, %373, %cst_276 {dimension_numbers = #tpu.dot_dimension_numbers<[1], [0], [0], [1], [0, 0, 1, 1], [], []>} : vector<16x32xf32>, vector<32x128xf32>, vector<16x128xf32> -> vector<16x128xf32>
    %c1_277 = arith.constant 1 : index
    %c0_278 = arith.constant 0 : index
    %c0_279 = arith.constant 0 : index
    %375 = vector.load %arg12[%c1_277, %c0_278, %c0_279] : memref<2x1x128xf32, #tpu.memory_space<vmem>>, vector<1x1x128xf32>
    %376 = vector.shape_cast %375 : vector<1x1x128xf32> to vector<1x128xf32>
    %377 = vector.broadcast %376 : vector<1x128xf32> to vector<16x128xf32>
    %378 = arith.addf %374, %377 : vector<16x128xf32>
    %c0_280 = arith.constant 0 : index
    %c0_281 = arith.constant 0 : index
    %379 = vector.load %arg14[%c0_280, %c0_281] : memref<16x128xf32, #tpu.memory_space<vmem>>, vector<16x128xf32>
    tpu.vector_store %arg14[%c0_280, %c0_281], %378 {strides = array<i32>} : memref<16x128xf32, #tpu.memory_space<vmem>>, vector<16x128xf32>,
    return
  }
  func.func @transform_0(%arg0: i32) -> (i32, i32) {
    %c0_i32 = arith.constant 0 : i32
    %c0_i32_0 = arith.constant 0 : i32
    %c0_i32_1 = arith.constant 0 : i32
    return %c0_i32, %c0_i32_0 : i32, i32
  }
  func.func @transform_1(%arg0: i32) -> (i32, i32) {
    %c0_i32 = arith.constant 0 : i32
    %c0_i32_0 = arith.constant 0 : i32
    %c0_i32_1 = arith.constant 0 : i32
    return %c0_i32, %c0_i32_0 : i32, i32
  }
  func.func @transform_2(%arg0: i32) -> (i32, i32, i32, i32, i32) {
    %c0_i32 = arith.constant 0 : i32
    %c0_i32_0 = arith.constant 0 : i32
    %c0_i32_1 = arith.constant 0 : i32
    %c0_i32_2 = arith.constant 0 : i32
    %c0_i32_3 = arith.constant 0 : i32
    %c0_i32_4 = arith.constant 0 : i32
    return %c0_i32, %c0_i32_0, %c0_i32_1, %c0_i32_2, %c0_i32_3 : i32, i32, i32, i32, i32
  }
  func.func @transform_3(%arg0: i32) -> (i32, i32, i32, i32, i32) {
    %c0_i32 = arith.constant 0 : i32
    %c0_i32_0 = arith.constant 0 : i32
    %c0_i32_1 = arith.constant 0 : i32
    %c0_i32_2 = arith.constant 0 : i32
    %c0_i32_3 = arith.constant 0 : i32
    %c0_i32_4 = arith.constant 0 : i32
    return %c0_i32, %c0_i32_0, %c0_i32_1, %c0_i32_2, %c0_i32_3 : i32, i32, i32, i32, i32
  }
  func.func @transform_4(%arg0: i32) -> (i32, i32, i32, i32) {
    %c0_i32 = arith.constant 0 : i32
    %c0_i32_0 = arith.constant 0 : i32
    %c0_i32_1 = arith.constant 0 : i32
    %c0_i32_2 = arith.constant 0 : i32
    %c0_i32_3 = arith.constant 0 : i32
    return %c0_i32, %c0_i32_0, %c0_i32_1, %c0_i32_2 : i32, i32, i32, i32
  }
  func.func @transform_5(%arg0: i32) -> (i32, i32, i32) {
    %c0_i32 = arith.constant 0 : i32
    %c0_i32_0 = arith.constant 0 : i32
    %c0_i32_1 = arith.constant 0 : i32
    %c0_i32_2 = arith.constant 0 : i32
    return %c0_i32, %c0_i32_0, %c0_i32_1 : i32, i32, i32
  }
  func.func @transform_6(%arg0: i32) -> (i32, i32, i32) {
    %c0_i32 = arith.constant 0 : i32
    %c0_i32_0 = arith.constant 0 : i32
    %c0_i32_1 = arith.constant 0 : i32
    %c0_i32_2 = arith.constant 0 : i32
    return %c0_i32, %c0_i32_0, %c0_i32_1 : i32, i32, i32
  }
  func.func @transform_7(%arg0: i32) -> (i32, i32, i32) {
    %c0_i32 = arith.constant 0 : i32
    %c0_i32_0 = arith.constant 0 : i32
    %c0_i32_1 = arith.constant 0 : i32
    %c0_i32_2 = arith.constant 0 : i32
    return %c0_i32, %c0_i32_0, %c0_i32_1 : i32, i32, i32
  }
  func.func @transform_8(%arg0: i32) -> (i32, i32, i32) {
    %c0_i32 = arith.constant 0 : i32
    %c0_i32_0 = arith.constant 0 : i32
    %c0_i32_1 = arith.constant 0 : i32
    %c0_i32_2 = arith.constant 0 : i32
    return %c0_i32, %c0_i32_0, %c0_i32_1 : i32, i32, i32
  }
  func.func @transform_9(%arg0: i32) -> (i32, i32) {
    %c0_i32 = arith.constant 0 : i32
    %c0_i32_0 = arith.constant 0 : i32
    %c0_i32_1 = arith.constant 0 : i32
    return %c0_i32, %c0_i32_0 : i32, i32
  }
  func.func @transform_10(%arg0: i32) -> (i32, i32, i32) {
    %c0_i32 = arith.constant 0 : i32
    %c0_i32_0 = arith.constant 0 : i32
    %c0_i32_1 = arith.constant 0 : i32
    %c0_i32_2 = arith.constant 0 : i32
    return %c0_i32, %c0_i32_0, %c0_i32_1 : i32, i32, i32
  }
  func.func @transform_11(%arg0: i32) -> (i32, i32, i32) {
    %c0_i32 = arith.constant 0 : i32
    %c0_i32_0 = arith.constant 0 : i32
    %c0_i32_1 = arith.constant 0 : i32
    %c0_i32_2 = arith.constant 0 : i32
    return %c0_i32, %c0_i32_0, %c0_i32_1 : i32, i32, i32
  }
  func.func @transform_12(%arg0: i32) -> (i32, i32) {
    %c0_i32 = arith.constant 0 : i32
    %c0_i32_0 = arith.constant 0 : i32
    %c0_i32_1 = arith.constant 0 : i32
    return %c0_i32, %c0_i32_0 : i32, i32
  }
  func.func @transform_13(%arg0: i32) -> (i32, i32) {
    %c0_i32 = arith.constant 0 : i32
    %c0_i32_0 = arith.constant 0 : i32
    %c0_i32_1 = arith.constant 0 : i32
    return %c0_i32, %c0_i32_0 : i32, i32
  }
}

</mosaic_0001>

<bundles_post_ra>
// kernel: multi_task_forward.1
= control target key start
LH: loop header
LB: loop body
LE: loop exit
PB: predicated region body
PF: predicated region fallthrough
CT: control target
= control target key end

     0   :  { %vm50_vm0 = vcmask 261120   ;;  %v1841_v4 = vmov 32.0   ;;  %vm215_vm8 = vcmask 130048   ;;  %vm693_vm15 = vcmask 523264   ;;  %s2501_s0 = inlined_call_operand.vmem [shape: f32[16,32], index: 0, kind: input, shape index: {}]   ;;  %s2502_s8 = inlined_call_operand.vmem [shape: f32[15,1,32], index: 8, kind: input, shape index: {}]   ;;  %s2503_s3 = inlined_call_operand.vmem [shape: f32[2,2,3,1,16], index: 3, kind: input, shape index: {}]   ;;  %s2504_s2 = inlined_call_operand.vmem [shape: f32[2,2,3,32,16], index: 2, kind: input, shape index: {}]   ;;  %s2505_s1 = inlined_call_operand.vmem [shape: f32[16,16], index: 1, kind: input, shape index: {}]   ;;  %s2506_s4 = inlined_call_operand.vmem [shape: f32[2,2,16,32], index: 4, kind: input, shape index: {}]   ;;  %s2507_s6 = inlined_call_operand.vmem [shape: f32[2,1,64], index: 6, kind: input, shape index: {}]   ;;  %s2508_s5 = inlined_call_operand.vmem [shape: f32[2,32,64], index: 5, kind: input, shape index: {}]   ;;  %s2509_s7 = inlined_call_operand.vmem [shape: f32[2,64,32], index: 7, kind: input, shape index: {}]   ;;  %s2510_s9 = inlined_call_operand.vmem [shape: f32[32,32], index: 9, kind: input, shape index: {}]   ;;  %s2511_s10 = inlined_call_operand.vmem [shape: f32[2,32,128], index: 10, kind: input, shape index: {}]   ;;  %s2512_s11 = inlined_call_operand.vmem [shape: f32[2,1,128], index: 11, kind: input, shape index: {}]   ;;  %s2513_s13 = inlined_call_operand.vmem [shape: f32[16,128], index: 13, kind: output, shape index: {1}]   ;;  %s2514_s12 = inlined_call_operand.vmem [shape: f32[16,128], index: 12, kind: output, shape index: {0}]  }
   0x1   :  { %v43_v0 = vld [vmem:[%s2501_s0] sm:$0xff]  ;;  %v44_v2 = vld [vmem:[%s2501_s0 + $0x8] sm:$0xff]  ;;  %1779 = vrcp.f32 %v1841_v4  ;;  %v115_v21 = vld [vmem:[%s2504_s2 + $0x18] sm:$0xff] }
   0x2   :  { %v51_v1 = vsel %vm50_vm0, %v43_v0, 0.0  ;;  %v54_v3 = vsel %vm50_vm0, %v44_v2, 0.0  ;;  %v1586_v22 = vld [vmem:[%s2504_s2 + $0x38] sm:$0xff]  ;;  %138 = vmatpush.msra.mxu0 %v115_v21  ;;  %v114_v24 = vld [vmem:[%s2504_s2 + $0x10] sm:$0xff]  ;;  %1743 = vmatpush.msra.mxu3 %v115_v21  ;;  %v113_v27 = vld [vmem:[%s2504_s2 + $0x8] sm:$0xff] }
   0x3   :  { %52 = vadd.xlane.f32.xlu0 %v51_v1  ;;  %v1593_v23 = vld [vmem:[%s2504_s2 + $0x58] sm:$0xff]  ;;  %171 = vmatpush.msra.mxu1 %v1586_v22  ;;  %v1585_v25 = vld [vmem:[%s2504_s2 + $0x30] sm:$0xff]  ;;  %v1584_v28 = vld [vmem:[%s2504_s2 + $0x28] sm:$0xff] }
   0x4   :  { %204 = vmatpush.msra.mxu2 %v1593_v23  ;;  %v1592_v26 = vld [vmem:[%s2504_s2 + $0x50] sm:$0xff]  ;;  %139 = vmatpush.msra.mxu0 %v114_v24  ;;  %v1591_v29 = vld [vmem:[%s2504_s2 + $0x48] sm:$0xff]  ;;  %v112_v30 = vld [vmem:[%s2504_s2] sm:$0xff] }
   0x5   :  { %172 = vmatpush.msra.mxu1 %v1585_v25  ;;  %1744 = vmatpush.msra.mxu3 %v114_v24  ;;  %v1583_v31 = vld [vmem:[%s2504_s2 + $0x20] sm:$0xff]  ;;  %v1606_v36 = vld [vmem:[%s2504_s2 + $0x78] sm:$0xff]  ;;  %v1605_v38 = vld [vmem:[%s2504_s2 + $0x70] sm:$0xff] }
   0x6   :  { %205 = vmatpush.msra.mxu2 %v1592_v26  ;;  %140 = vmatpush.msra.mxu0 %v113_v27  ;;  %v1590_v32 = vld [vmem:[%s2504_s2 + $0x40] sm:$0xff]  ;;  %v1613_v37 = vld [vmem:[%s2504_s2 + $0x98] sm:$0xff]  ;;  %v1612_v39 = vld [vmem:[%s2504_s2 + $0x90] sm:$0xff] }
   0x7   :  { %v1780_v5 = vpop.eup %1779  ;;  %173 = vmatpush.msra.mxu1 %v1584_v28  ;;  %1745 = vmatpush.msra.mxu3 %v113_v27  ;;  %v1604_v41 = vld [vmem:[%s2504_s2 + $0x68] sm:$0xff]  ;;  %v1603_v44 = vld [vmem:[%s2504_s2 + $0x60] sm:$0xff] }
   0x8   :  { %v58_v6 = vmul.f32 32.0, %v1780_v5  ;;  %vm62_vm1 = vweird.f32 %v1780_v5  ;;  %206 = vmatpush.msra.mxu2 %v1591_v29  ;;  %141 = vmatpush.msra.mxu0 %v112_v30  ;;  %v1611_v42 = vld [vmem:[%s2504_s2 + $0x88] sm:$0xff]  ;;  %v1610_v45 = vld [vmem:[%s2504_s2 + $0x80] sm:$0xff] }
   0x9   :  { %174 = vmatpush.msra.mxu1 %v1583_v31  ;;  %1746 = vmatpush.msra.mxu3 %v112_v30  ;;  %v1748_v55 = vld [vmem:[%s2502_s8] ss:$0 sm:$0xff]  ;;  %v1749_v58 = vld [vmem:[%s2502_s8 + $0x1] ss:$0 sm:$0xff]  ;;  %v1618_v21 = vld [vmem:[%s2504_s2 + $0xa8] sm:$0xff] }
   0xa   :  { %v59_v7 = vsub.f32 1.0, %v58_v6  ;;  %207 = vmatpush.msra.mxu2 %v1590_v32  ;;  %v1751_v6 = vld [vmem:[%s2503_s3 + $0x1] ss:$0 sm:$0xff]  ;;  %v1754_v26 = vld [vmem:[%s2503_s3 + $0x4] ss:$0 sm:$0xff] }
   0xb   :  { %55 = vadd.xlane.f32.xlu0 %v54_v3  ;;  %330 = vmatpush.msrb.mxu1 %v1606_v36  ;;  %v1617_v22 = vld [vmem:[%s2504_s2 + $0xa0] sm:$0xff]  ;;  %v2072_v36 = vld [vmem:[%s2505_s1 + $0x8] sm:$0xff] }
   0xc   :  { %v60_v8 = vmul.f32 %v1780_v5, %v59_v7  ;;  %363 = vmatpush.msrb.mxu2 %v1613_v37  ;;  %v2065_v31 = vld [vmem:[%s2505_s1] sm:$0xff] }
   0xd   :  { %331 = vmatpush.msrb.mxu1 %v1605_v38 }
   0xe   :  { %v61_v9 = vadd.f32 %v1780_v5, %v60_v8  ;;  %364 = vmatpush.msrb.mxu2 %v1612_v39 }
   0xf   :  { %332 = vmatpush.msrb.mxu1 %v1604_v41  ;;  %v1755_v41 = vld [vmem:[%s2503_s3 + $0x5] ss:$0 sm:$0xff] }
  0x10   :  { %v1920_v10 = vsel %vm62_vm1, %v1780_v5, %v61_v9  ;;  %365 = vmatpush.msrb.mxu2 %v1611_v42 }
  0x11   :  { %333 = vmatpush.msrb.mxu1 %v1603_v44 }
  0x12   :  { %366 = vmatpush.msrb.mxu2 %v1610_v45 }
  0x76   :  { %v53_v11 = vpop.xlane.xlu0 %52 }
  0x77   :  { %v64_v12 = vmul.f32 %v1920_v10, %v53_v11  ;;  %v1750_v11 = vld [vmem:[%s2503_s3] ss:$0 sm:$0xff] }
  0x79   :  { %v1923_v13 = vsub.f32 %v43_v0, %v64_v12 }
  0x7b   :  { %v68_v14 = vmul.f32 %v1923_v13, %v1923_v13 }
  0x7d   :  { %v70_v15 = vsel %vm50_vm0, %v68_v14, 0.0  ;;  %v1620_v14 = vld [vmem:[%s2504_s2 + $0xb8] sm:$0xff] }
  0x7e   :  { %71 = vadd.xlane.f32.xlu1 %v70_v15  ;;  %v56_v16 = vpop.xlane.xlu0 %55  ;;  %v1752_v15 = vld [vmem:[%s2503_s3 + $0x2] ss:$0 sm:$0xff] }
  0x7f   :  { %v65_v17 = vmul.f32 %v1920_v10, %v56_v16 }
  0x81   :  { %v1929_v18 = vsub.f32 %v44_v2, %v65_v17 }
  0x83   :  { %v69_v19 = vmul.f32 %v1929_v18, %v1929_v18 }
  0x85   :  { %v73_v20 = vsel %vm50_vm0, %v69_v19, 0.0  ;;  %v1619_v19 = vld [vmem:[%s2504_s2 + $0xb0] sm:$0xff] }
  0x86   :  { %74 = vadd.xlane.f32.xlu1 %v73_v20 }
  0xf1   :  { %v72_v33 = vpop.xlane.xlu1 %71 }
  0xf2   :  { %v76_v34 = vmul.f32 %v72_v33, %v1920_v10 }
  0xf4   :  { %v78_v35 = vadd.f32 1e-12, %v76_v34 }
  0xf6   :  { %1781 = vrsqrt.f32 %v78_v35  ;;  %vm86_vm3 = vweird.f32 %v78_v35 }
  0xf9   :  { %v75_v40 = vpop.xlane.xlu1 %74 }
  0xfa   :  { %v77_v43 = vmul.f32 %v75_v40, %v1920_v10 }
  0xfc   :  { %v1782_v46 = vpop.eup %1781  ;;  %v79_v47 = vadd.f32 1e-12, %v77_v43 }
  0xfd   :  { %v81_v48 = vmul.f32 %v1782_v46, %v78_v35  ;;  %vm87_vm2 = vweird.f32 %v1782_v46 }
  0xfe   :  { %1783 = vrsqrt.f32 %v79_v47  ;;  %vm88_vm4 = vmor %vm86_vm3, %vm87_vm2  ;;  %vm96_vm6 = vweird.f32 %v79_v47 }
  0xff   :  { %v82_v49 = vmul.f32 %v1782_v46, %v81_v48 }
 0x101   :  { %v83_v50 = vmul.f32 0.5, %v82_v49 }
 0x103   :  { %v84_v51 = vsub.f32 1.5, %v83_v50 }
 0x104   :  { %v1784_v52 = vpop.eup %1783 }
 0x105   :  { %v85_v53 = vmul.f32 %v1782_v46, %v84_v51  ;;  %v91_v54 = vmul.f32 %v1784_v52, %v79_v47  ;;  %vm97_vm5 = vweird.f32 %v1784_v52 }
 0x106   :  { %vm98_vm7 = vmor %vm96_vm6, %vm97_vm5 }
 0x107   :  { %v89_v56 = vsel %vm88_vm4, %v1782_v46, %v85_v53  ;;  %v92_v57 = vmul.f32 %v1784_v52, %v91_v54 }
 0x108   :  { %v100_v59 = vmul.f32 %v89_v56, %v1923_v13  ;;  %v307_v56 = vld [vmem:[%s2506_s4 + $0x8] sm:$0xff] }
 0x109   :  { %v93_v60 = vmul.f32 0.5, %v92_v57 }
 0x10a   :  { %v105_v61 = vmul.f32 %v1748_v55, %v100_v59 }
 0x10b   :  { %v94_v62 = vsub.f32 1.5, %v93_v60 }
 0x10c   :  { %v2003_v63 = vadd.f32 %v1749_v58, %v105_v61 }
 0x10d   :  { %v95_v0 = vmul.f32 %v1784_v52, %v94_v62 }
 0x10e   :  { %1581 = vmatmul.msk.f32.vlgmr.msra.gmra.mxu0 %vm50_vm0, %v2003_v63  ;;  %1588 = vmatmul.msk.f32.vlgmr.msra.gmra.mxu1 %vm50_vm0, %v2003_v63 }
 0x10f   :  { %v99_v1 = vsel %vm98_vm7, %v1784_v52, %v95_v0  ;;  %1595 = vmatmul.msk.f32.vlgmr.msra.gmra.mxu2 %vm50_vm0, %v2003_v63  ;;  %v1753_v0 = vld [vmem:[%s2503_s3 + $0x3] ss:$0 sm:$0xff] }
 0x110   :  { %v101_v2 = vmul.f32 %v99_v1, %v1929_v18 }
 0x112   :  { %v106_v3 = vmul.f32 %v1748_v55, %v101_v2 }
 0x114   :  { %v2012_v4 = vadd.f32 %v1749_v58, %v106_v3 }
 0x116   :  { %1582 = vmatmul.msk.f32.vlgmr.msra.gmra.mxu3 %vm50_vm0, %v2012_v4  ;;  %1589 = vmatmul.msk.f32.gmra.mxu1 %vm50_vm0, %v2012_v4 }
 0x117   :  { %1596 = vmatmul.msk.f32.gmra.mxu2 %vm50_vm0, %v2012_v4 }
 0x11e   :  { %1608 = vmatmul.msk.f32.vlgmr.msrb.gmra.mxu1 %vm50_vm0, %v2003_v63 }
 0x11f   :  { %1615 = vmatmul.msk.f32.vlgmr.msrb.gmra.mxu2 %vm50_vm0, %v2003_v63 }
 0x126   :  { %1609 = vmatmul.msk.f32.gmra.mxu1 %vm50_vm0, %v2012_v4 }
 0x127   :  { %1616 = vmatmul.msk.f32.gmra.mxu2 %vm50_vm0, %v2012_v4 }
 0x18b   :  { %v176_v5 = vpop.f32.mrf.mxu1  ;;  %v143_v12 = vpop.f32.mrf.mxu0 }
 0x18c   :  { %v177_v13 = vadd.f32 %v1751_v6, %v176_v5  ;;  %v144_v17 = vadd.f32 %v1750_v11, %v143_v12  ;;  %v306_v5 = vld [vmem:[%s2506_s4] sm:$0xff] }
 0x192   :  { %v209_v7 = vpop.f32.mrf.mxu2 }
 0x193   :  { %v179_v8 = vpop.f32.mrf.mxu1  ;;  %v210_v20 = vadd.f32 %v1752_v15, %v209_v7 }
 0x194   :  { %v180_v9 = vadd.f32 %v1751_v6, %v179_v8 }
 0x196   :  { %1597 = vmatpush.xpose.msk.msrb.mxu3 %vm215_vm8, %v180_v9 }
 0x199   :  { %v146_v23 = vpop.f32.mrf.mxu3 }
 0x19a   :  { %v212_v16 = vpop.f32.mrf.mxu2  ;;  %1598 = vmatpush.xpose.msk.msrb.mxu3 %vm215_vm8, %v177_v13  ;;  %v147_v25 = vadd.f32 %v1750_v11, %v146_v23 }
 0x19b   :  { %v213_v18 = vadd.f32 %v1752_v15, %v212_v16  ;;  %v335_v62 = vpop.f32.mrf.mxu1 }
 0x19c   :  { %v336_v1 = vadd.f32 %v1753_v0, %v335_v62  ;;  %v626_v62 = vld [vmem:[%s2508_s5 + $0x8] sm:$0xff] }
 0x19d   :  { %297 = vmatpush.msrb.mxu0 %v213_v18  ;;  %1599 = vmatmul.msk.f32.vlgmr.msrb.gmra.mxu3 %vm215_vm8, %v144_v17 }
 0x19e   :  { %396 = vmatpush.msra.mxu3 %v1620_v14 }
 0x19f   :  { %298 = vmatpush.msrb.mxu0 %v210_v20 }
 0x1a0   :  { %397 = vmatpush.msra.mxu3 %v1619_v19 }
 0x1a2   :  { %398 = vmatpush.msra.mxu3 %v1618_v21  ;;  %v368_v24 = vpop.f32.mrf.mxu2 }
 0x1a3   :  { %v369_v29 = vadd.f32 %v1754_v26, %v368_v24  ;;  %v338_v2 = vpop.f32.mrf.mxu1 }
 0x1a4   :  { %399 = vmatpush.msra.mxu3 %v1617_v22  ;;  %v339_v3 = vadd.f32 %v1753_v0, %v338_v2  ;;  %v625_v0 = vld [vmem:[%s2508_s5] sm:$0xff] }
 0x1a5   :  { %1600 = vmatmul.msk.f32.gmra.mxu3 %vm215_vm8, %v147_v25 }
 0x1a6   :  { %549 = vmatpush.msrb.mxu3 %v307_v56 }
 0x1a8   :  { %550 = vmatpush.msrb.mxu3 %v306_v5 }
 0x1aa   :  { %v371_v27 = vpop.f32.mrf.mxu2 }
 0x1ab   :  { %v372_v28 = vadd.f32 %v1754_v26, %v371_v27  ;;  %v1631_v27 = vld [vmem:[%s2506_s4 + $0x18] sm:$0xff] }
 0x1ac   :  { %520 = vmatpush.msra.mxu2 %v1631_v27 }
 0x1ad   :  { %1624 = vmatpush.xpose.msk.msra.mxu0 %vm215_vm8, %v372_v28  ;;  %1622 = vmatmul.msk.f32.vlgmr.msra.gmra.mxu3 %vm50_vm0, %v2003_v63 }
 0x1b1   :  { %1625 = vmatpush.xpose.msk.msra.mxu0 %vm215_vm8, %v369_v29 }
 0x1b5   :  { %1623 = vmatmul.msk.f32.gmra.mxu3 %vm50_vm0, %v2012_v4 }
 0x220   :  { %v245_v30 = vpop.f32.mrf.mxu3 }
 0x221   :  { %v251_v32 = vmul.f32 0.25, %v245_v30 }
 0x223   :  { %v253_v33 = vadd.f32 %v251_v32, %v2065_v31 }
 0x225   :  { %v255_v34 = vsel %vm215_vm8, %v253_v33, -inf }
 0x226   :  { %256 = vmax.xlane.f32.xlu2 %v255_v34 }
 0x228   :  { %v248_v35 = vpop.f32.mrf.mxu3 }
 0x229   :  { %v252_v37 = vmul.f32 0.25, %v248_v35  ;;  %v1630_v35 = vld [vmem:[%s2506_s4 + $0x10] sm:$0xff] }
 0x22a   :  { %521 = vmatpush.msra.mxu2 %v1630_v35  ;;  %v684_v35 = vld [vmem:[%s2509_s7 + $0x20] sm:$0xff] }
 0x22b   :  { %v254_v38 = vadd.f32 %v252_v37, %v2072_v36 }
 0x22d   :  { %v258_v39 = vsel %vm215_vm8, %v254_v38, -inf }
 0x22e   :  { %259 = vmax.xlane.f32.xlu2 %v258_v39 }
 0x230   :  { %v401_v40 = vpop.f32.mrf.mxu3 }
 0x231   :  { %v402_v44 = vadd.f32 %v1755_v41, %v401_v40  ;;  %v1756_v40 = vld [vmem:[%s2502_s8 + $0x3] ss:$0 sm:$0xff] }
 0x238   :  { %v404_v42 = vpop.f32.mrf.mxu3 }
 0x239   :  { %v405_v43 = vadd.f32 %v1755_v41, %v404_v42 }
 0x23b   :  { %488 = vmatpush.msra.mxu1 %v405_v43 }
 0x23d   :  { %489 = vmatpush.msra.mxu1 %v402_v44 }
 0x299   :  { %v257_v45 = vpop.xlane.xlu2 %256 }
 0x29a   :  { %v261_v46 = vsub.f32 %v253_v33, %v257_v45 }
 0x29c   :  { %v263_v47 = vmul.f32 1.442695, %v261_v46 }
 0x29e   :  { %1785 = vpow2.f32 %v263_v47 }
 0x2a1   :  { %v260_v48 = vpop.xlane.xlu2 %259 }
 0x2a2   :  { %v262_v49 = vsub.f32 %v254_v38, %v260_v48 }
 0x2a4   :  { %v1786_v50 = vpop.eup %1785  ;;  %v265_v51 = vmul.f32 1.442695, %v262_v49 }
 0x2a5   :  { %v267_v52 = vsel %vm215_vm8, %v1786_v50, 0.0 }
 0x2a6   :  { %1787 = vpow2.f32 %v265_v51  ;;  %268 = vadd.xlane.f32.xlu0 %v267_v52 }
 0x2ac   :  { %v1788_v53 = vpop.eup %1787 }
 0x2ad   :  { %v270_v54 = vsel %vm215_vm8, %v1788_v53, 0.0 }
 0x2ae   :  { %271 = vadd.xlane.f32.xlu1 %v270_v54 }
 0x319   :  { %v269_v55 = vpop.xlane.xlu0 %268 }
 0x31a   :  { %1789 = vrcp.f32 %v269_v55 }
 0x320   :  { %v1790_v57 = vpop.eup %1789 }
 0x321   :  { %v272_v58 = vpop.xlane.xlu1 %271  ;;  %v275_v59 = vmul.f32 %v1790_v57, %v1786_v50 }
 0x322   :  { %1791 = vrcp.f32 %v272_v58 }
 0x323   :  { %1601 = vmatmul.msk.f32.vlgmr.msrb.gmra.mxu0 %vm215_vm8, %v275_v59 }
 0x328   :  { %v1792_v60 = vpop.eup %1791 }
 0x329   :  { %v276_v61 = vmul.f32 %v1792_v60, %v1788_v53 }
 0x32b   :  { %1602 = vmatmul.msk.f32.gmra.mxu0 %vm215_vm8, %v276_v61  ;;  %v627_v61 = vld [vmem:[%s2508_s5 + $0x10] sm:$0xff] }
 0x333   :  { %1626 = vmatmul.msk.f32.vlgmr.msra.gmra.mxu0 %vm215_vm8, %v336_v1 }
 0x33b   :  { %1627 = vmatmul.msk.f32.gmra.mxu0 %vm215_vm8, %v339_v3 }
 0x3a0   :  { %v300_v6 = vpop.f32.mrf.mxu0 }
 0x3a1   :  { %1634 = vmatmul.msk.f32.vlgmr.msrb.gmra.mxu3 %vm215_vm8, %v300_v6 }
 0x3a8   :  { %v303_v7 = vpop.f32.mrf.mxu0 }
 0x3a9   :  { %1635 = vmatmul.msk.f32.gmra.mxu3 %vm215_vm8, %v303_v7 }
 0x3b0   :  { %v436_v8 = vpop.f32.mrf.mxu0 }
 0x3b1   :  { %v442_v9 = vmul.f32 0.25, %v436_v8 }
 0x3b3   :  { %v444_v11 = vadd.f32 %v442_v9, %v2065_v31 }
 0x3b5   :  { %v446_v12 = vsel %vm215_vm8, %v444_v11, -inf }
 0x3b6   :  { %447 = vmax.xlane.f32.xlu2 %v446_v12 }
 0x3b8   :  { %v439_v13 = vpop.f32.mrf.mxu0 }
 0x3b9   :  { %v443_v14 = vmul.f32 0.25, %v439_v13 }
 0x3bb   :  { %v445_v15 = vadd.f32 %v443_v14, %v2072_v36 }
 0x3bd   :  { %v449_v16 = vsel %vm215_vm8, %v445_v15, -inf }
 0x3be   :  { %450 = vmax.xlane.f32.xlu0 %v449_v16 }
 0x424   :  { %v552_v39 = vpop.f32.mrf.mxu3 }
 0x429   :  { %v448_v17 = vpop.xlane.xlu2 %447 }
 0x42a   :  { %v452_v18 = vsub.f32 %v444_v11, %v448_v17  ;;  %v1757_v17 = vld [vmem:[%s2502_s8 + $0x4] ss:$0 sm:$0xff] }
 0x42c   :  { %v454_v19 = vmul.f32 1.442695, %v452_v18  ;;  %v555_v46 = vpop.f32.mrf.mxu3 }
 0x42e   :  { %1793 = vpow2.f32 %v454_v19 }
 0x431   :  { %v451_v20 = vpop.xlane.xlu0 %450 }
 0x432   :  { %v453_v21 = vsub.f32 %v445_v15, %v451_v20 }
 0x434   :  { %v1794_v22 = vpop.eup %1793  ;;  %v456_v23 = vmul.f32 1.442695, %v453_v21  ;;  %v1758_v21 = vld [vmem:[%s2502_s8 + $0x5] ss:$0 sm:$0xff] }
 0x435   :  { %v458_v24 = vsel %vm215_vm8, %v1794_v22, 0.0 }
 0x436   :  { %1795 = vpow2.f32 %v456_v23  ;;  %459 = vadd.xlane.f32.xlu1 %v458_v24 }
 0x43c   :  { %v1796_v25 = vpop.eup %1795 }
 0x43d   :  { %v461_v26 = vsel %vm215_vm8, %v1796_v25, 0.0 }
 0x43e   :  { %462 = vadd.xlane.f32.xlu2 %v461_v26 }
 0x4a9   :  { %v460_v28 = vpop.xlane.xlu1 %459 }
 0x4aa   :  { %1797 = vrcp.f32 %v460_v28 }
 0x4b0   :  { %v1798_v29 = vpop.eup %1797 }
 0x4b1   :  { %v466_v30 = vmul.f32 %v1798_v29, %v1794_v22  ;;  %v463_v32 = vpop.xlane.xlu2 %462 }
 0x4b2   :  { %1799 = vrcp.f32 %v463_v32  ;;  %v687_v32 = vld [vmem:[%s2509_s7 + $0x38] sm:$0xff] }
 0x4b3   :  { %1628 = vmatmul.msk.f32.vlgmr.msra.gmra.mxu1 %vm215_vm8, %v466_v30 }
 0x4b4   :  { %708 = vmatpush.msrb.mxu1 %v687_v32  ;;  %v1660_v32 = vld [vmem:[%s2504_s2 + $0x100] sm:$0xff] }
 0x4b8   :  { %v1800_v33 = vpop.eup %1799 }
 0x4b9   :  { %v467_v34 = vmul.f32 %v1800_v33, %v1796_v25  ;;  %v686_v33 = vld [vmem:[%s2509_s7 + $0x30] sm:$0xff] }
 0x4ba   :  { %709 = vmatpush.msrb.mxu1 %v686_v33 }
 0x4bb   :  { %1629 = vmatmul.msk.f32.gmra.mxu1 %vm215_vm8, %v467_v34  ;;  %v685_v34 = vld [vmem:[%s2509_s7 + $0x28] sm:$0xff] }
 0x4bc   :  { %710 = vmatpush.msrb.mxu1 %v685_v34 }
 0x4be   :  { %711 = vmatpush.msrb.mxu1 %v684_v35 }
 0x530   :  { %v491_v37 = vpop.f32.mrf.mxu1 }
 0x531   :  { %1632 = vmatmul.msk.f32.vlgmr.msra.gmra.mxu2 %vm215_vm8, %v491_v37  ;;  %v683_v37 = vld [vmem:[%s2509_s7 + $0x18] sm:$0xff] }
 0x532   :  { %712 = vmatpush.msrb.mxu1 %v683_v37  ;;  %v1678_v37 = vld [vmem:[%s2504_s2 + $0x138] sm:$0xff] }
 0x538   :  { %v494_v38 = vpop.f32.mrf.mxu1 }
 0x539   :  { %1633 = vmatmul.msk.f32.gmra.mxu2 %vm215_vm8, %v494_v38  ;;  %v682_v38 = vld [vmem:[%s2509_s7 + $0x10] sm:$0xff] }
 0x53a   :  { %713 = vmatpush.msrb.mxu1 %v682_v38  ;;  %v1685_v38 = vld [vmem:[%s2504_s2 + $0x158] sm:$0xff] }
 0x5b4   :  { %v523_v41 = vpop.f32.mrf.mxu2 }
 0x5b5   :  { %v553_v42 = vadd.f32 %v552_v39, %v523_v41  ;;  %v681_v39 = vld [vmem:[%s2509_s7 + $0x8] sm:$0xff]  ;;  %v1759_v41 = vld [vmem:[%s2507_s6] ss:$0 sm:$0xff] }
 0x5b6   :  { %714 = vmatpush.msrb.mxu1 %v681_v39  ;;  %v1677_v39 = vld [vmem:[%s2504_s2 + $0x130] sm:$0xff] }
 0x5b7   :  { %v563_v43 = vadd.f32 %v1756_v40, %v553_v42 }
 0x5b9   :  { %v565_v44 = vadd.f32 %v563_v43, %v2003_v63 }
 0x5bb   :  { %v571_v45 = vsel %vm50_vm0, %v565_v44, 0.0 }
 0x5bc   :  { %572 = vadd.xlane.f32.xlu0 %v571_v45  ;;  %v526_v47 = vpop.f32.mrf.mxu2 }
 0x5bd   :  { %v556_v48 = vadd.f32 %v555_v46, %v526_v47 }
 0x5bf   :  { %v564_v49 = vadd.f32 %v1756_v40, %v556_v48  ;;  %v680_v40 = vld [vmem:[%s2509_s7] sm:$0xff] }
 0x5c0   :  { %715 = vmatpush.msrb.mxu1 %v680_v40  ;;  %v1684_v40 = vld [vmem:[%s2504_s2 + $0x150] sm:$0xff] }
 0x5c1   :  { %v566_v50 = vadd.f32 %v564_v49, %v2012_v4  ;;  %v628_v4 = vld [vmem:[%s2508_s5 + $0x18] sm:$0xff] }
 0x5c2   :  { %651 = vmatpush.msrb.mxu0 %v628_v4 }
 0x5c3   :  { %v574_v51 = vsel %vm50_vm0, %v566_v50, 0.0 }
 0x5c4   :  { %575 = vadd.xlane.f32.xlu1 %v574_v51  ;;  %652 = vmatpush.msrb.mxu0 %v627_v61 }
 0x5c6   :  { %653 = vmatpush.msrb.mxu0 %v626_v62  ;;  %v1760_v62 = vld [vmem:[%s2502_s8 + $0x6] ss:$0 sm:$0xff] }
 0x5c8   :  { %654 = vmatpush.msrb.mxu0 %v625_v0 }
 0x62f   :  { %v573_v52 = vpop.xlane.xlu0 %572 }
 0x630   :  { %v577_v53 = vmul.f32 %v573_v52, %v1920_v10 }
 0x632   :  { %v579_v54 = vsub.f32 %v565_v44, %v577_v53 }
 0x634   :  { %v581_v55 = vmul.f32 %v579_v54, %v579_v54 }
 0x636   :  { %v583_v56 = vsel %vm50_vm0, %v581_v55, 0.0 }
 0x637   :  { %v576_v63 = vpop.xlane.xlu1 %575  ;;  %584 = vadd.xlane.f32.xlu2 %v583_v56 }
 0x638   :  { %v578_v57 = vmul.f32 %v576_v63, %v1920_v10 }
 0x63a   :  { %v580_v58 = vsub.f32 %v566_v50, %v578_v57 }
 0x63c   :  { %v582_v59 = vmul.f32 %v580_v58, %v580_v58 }
 0x63e   :  { %v586_v60 = vsel %vm50_vm0, %v582_v59, 0.0 }
 0x63f   :  { %587 = vadd.xlane.f32.xlu0 %v586_v60 }
 0x6aa   :  { %v585_v1 = vpop.xlane.xlu2 %584 }
 0x6ab   :  { %v589_v2 = vmul.f32 %v585_v1, %v1920_v10 }
 0x6ad   :  { %v591_v3 = vadd.f32 1e-12, %v589_v2 }
 0x6af   :  { %1801 = vrsqrt.f32 %v591_v3  ;;  %vm599_vm10 = vweird.f32 %v591_v3 }
 0x6b2   :  { %v588_v5 = vpop.xlane.xlu0 %587 }
 0x6b3   :  { %v590_v6 = vmul.f32 %v588_v5, %v1920_v10 }
 0x6b5   :  { %v1802_v7 = vpop.eup %1801  ;;  %v592_v8 = vadd.f32 1e-12, %v590_v6 }
 0x6b6   :  { %v594_v9 = vmul.f32 %v1802_v7, %v591_v3  ;;  %vm600_vm9 = vweird.f32 %v1802_v7 }
 0x6b7   :  { %1803 = vrsqrt.f32 %v592_v8  ;;  %vm601_vm11 = vmor %vm599_vm10, %vm600_vm9  ;;  %vm609_vm13 = vweird.f32 %v592_v8 }
 0x6b8   :  { %v595_v11 = vmul.f32 %v1802_v7, %v594_v9 }
 0x6ba   :  { %v596_v12 = vmul.f32 0.5, %v595_v11 }
 0x6bc   :  { %v597_v13 = vsub.f32 1.5, %v596_v12 }
 0x6bd   :  { %v1804_v14 = vpop.eup %1803 }
 0x6be   :  { %v598_v15 = vmul.f32 %v1802_v7, %v597_v13  ;;  %v604_v16 = vmul.f32 %v1804_v14, %v592_v8  ;;  %vm610_vm12 = vweird.f32 %v1804_v14 }
 0x6bf   :  { %vm611_vm14 = vmor %vm609_vm13, %vm610_vm12 }
 0x6c0   :  { %v602_v18 = vsel %vm601_vm11, %v1802_v7, %v598_v15  ;;  %v605_v19 = vmul.f32 %v1804_v14, %v604_v16 }
 0x6c1   :  { %v613_v20 = vmul.f32 %v602_v18, %v579_v54 }
 0x6c2   :  { %v606_v22 = vmul.f32 0.5, %v605_v19 }
 0x6c3   :  { %v618_v23 = vmul.f32 %v1757_v17, %v613_v20  ;;  %v1649_v20 = vld [vmem:[%s2504_s2 + $0xd8] sm:$0xff] }
 0x6c4   :  { %v607_v24 = vsub.f32 1.5, %v606_v22  ;;  %v1663_v22 = vld [vmem:[%s2504_s2 + $0x118] sm:$0xff]  ;;  %811 = vmatpush.msrb.mxu2 %v1649_v20 }
 0x6c5   :  { %v623_v25 = vadd.f32 %v1758_v21, %v618_v23  ;;  %877 = vmatpush.msra.mxu0 %v1663_v22  ;;  %v1648_v23 = vld [vmem:[%s2504_s2 + $0xd0] sm:$0xff]  ;;  %v1692_v20 = vld [vmem:[%s2504_s2 + $0x178] sm:$0xff] }
 0x6c6   :  { %v608_v26 = vmul.f32 %v1804_v14, %v607_v24  ;;  %v1655_v24 = vld [vmem:[%s2504_s2 + $0xf0] sm:$0xff]  ;;  %812 = vmatpush.msrb.mxu2 %v1648_v23  ;;  %v1766_v23 = vld [vmem:[%s2503_s3 + $0xa] ss:$0 sm:$0xff] }
 0x6c7   :  { %1639 = vmatmul.msk.f32.vlgmr.msrb.gmra.mxu0 %vm50_vm0, %v623_v25  ;;  %v1691_v22 = vld [vmem:[%s2504_s2 + $0x170] sm:$0xff] }
 0x6c8   :  { %v612_v27 = vsel %vm611_vm14, %v1804_v14, %v608_v26  ;;  %v1647_v26 = vld [vmem:[%s2504_s2 + $0xc8] sm:$0xff] }
 0x6c9   :  { %v614_v28 = vmul.f32 %v612_v27, %v580_v58  ;;  %v1654_v27 = vld [vmem:[%s2504_s2 + $0xe8] sm:$0xff]  ;;  %813 = vmatpush.msrb.mxu2 %v1647_v26 }
 0x6cb   :  { %v619_v29 = vmul.f32 %v1757_v17, %v614_v28  ;;  %v1661_v28 = vld [vmem:[%s2504_s2 + $0x108] sm:$0xff] }
 0x6cd   :  { %v624_v30 = vadd.f32 %v1758_v21, %v619_v29  ;;  %v1656_v21 = vld [vmem:[%s2504_s2 + $0xf8] sm:$0xff]  ;;  %v1646_v29 = vld [vmem:[%s2504_s2 + $0xc0] sm:$0xff] }
 0x6ce   :  { %844 = vmatpush.msra.mxu3 %v1656_v21  ;;  %814 = vmatpush.msrb.mxu2 %v1646_v29 }
 0x6cf   :  { %1640 = vmatmul.msk.f32.gmra.mxu0 %vm50_vm0, %v624_v30 }
 0x6d0   :  { %845 = vmatpush.msra.mxu3 %v1655_v24  ;;  %v1690_v24 = vld [vmem:[%s2504_s2 + $0x168] sm:$0xff] }
 0x6d2   :  { %846 = vmatpush.msra.mxu3 %v1654_v27  ;;  %v1689_v27 = vld [vmem:[%s2504_s2 + $0x160] sm:$0xff] }
 0x744   :  { %v656_v42 = vpop.f32.mrf.mxu0 }
 0x745   :  { %v657_v43 = vadd.f32 %v1759_v41, %v656_v42  ;;  %v1676_v42 = vld [vmem:[%s2504_s2 + $0x128] sm:$0xff] }
 0x747   :  { %v662_v44 = vmul.f32 %v657_v43, %v657_v43 }
 0x749   :  { %v664_v45 = vmul.f32 %v662_v44, %v657_v43 }
 0x74b   :  { %v666_v46 = vmul.f32 0.044715, %v664_v45  ;;  %v1675_v45 = vld [vmem:[%s2504_s2 + $0x120] sm:$0xff] }
 0x74c   :  { %v659_v47 = vpop.f32.mrf.mxu0 }
 0x74d   :  { %v668_v48 = vadd.f32 %v666_v46, %v657_v43  ;;  %v660_v49 = vadd.f32 %v1759_v41, %v659_v47  ;;  %v1682_v46 = vld [vmem:[%s2504_s2 + $0x140] sm:$0xff] }
 0x74f   :  { %v670_v50 = vmul.f32 0.7978846, %v668_v48  ;;  %v663_v51 = vmul.f32 %v660_v49, %v660_v49 }
 0x751   :  { %1805 = vtanh.f32 %v670_v50  ;;  %v665_v52 = vmul.f32 %v663_v51, %v660_v49 }
 0x753   :  { %v667_v53 = vmul.f32 0.044715, %v665_v52 }
 0x755   :  { %v669_v54 = vadd.f32 %v667_v53, %v660_v49 }
 0x757   :  { %v1806_v55 = vpop.eup %1805  ;;  %v671_v56 = vmul.f32 0.7978846, %v669_v54 }
 0x758   :  { %v674_v63 = vadd.f32 1.0, %v1806_v55 }
 0x759   :  { %1807 = vtanh.f32 %v671_v56  ;;  %v1761_v56 = vld [vmem:[%s2502_s8 + $0x7] ss:$0 sm:$0xff] }
 0x75a   :  { %v676_v57 = vmul.f32 0.5, %v674_v63 }
 0x75c   :  { %v678_v58 = vmul.f32 %v676_v57, %v657_v43  ;;  %v1683_v43 = vld [vmem:[%s2504_s2 + $0x148] sm:$0xff] }
 0x75e   :  { %1642 = vmatmul.msk.f32.vlgmr.msrb.gmra.mxu1 %vm693_vm15, %v678_v58  ;;  %v1762_v58 = vld [vmem:[%s2502_s8 + $0x8] ss:$0 sm:$0xff] }
 0x75f   :  { %v1808_v59 = vpop.eup %1807 }
 0x760   :  { %v675_v60 = vadd.f32 1.0, %v1808_v59 }
 0x762   :  { %v677_v4 = vmul.f32 0.5, %v675_v60 }
 0x764   :  { %v679_v61 = vmul.f32 %v677_v4, %v660_v49 }
 0x766   :  { %1643 = vmatmul.msk.f32.gmra.mxu1 %vm693_vm15, %v679_v61 }
 0x7db   :  { %v717_v0 = vpop.f32.mrf.mxu1 }
 0x7dc   :  { %v718_v1 = vadd.f32 %v1760_v62, %v717_v0 }
 0x7de   :  { %v723_v2 = vadd.f32 %v718_v1, %v623_v25  ;;  %v1662_v25 = vld [vmem:[%s2504_s2 + $0x110] sm:$0xff] }
 0x7df   :  { %878 = vmatpush.msra.mxu0 %v1662_v25 }
 0x7e0   :  { %v729_v3 = vsel %vm50_vm0, %v723_v2, 0.0 }
 0x7e1   :  { %730 = vadd.xlane.f32.xlu1 %v729_v3  ;;  %879 = vmatpush.msra.mxu0 %v1661_v28 }
 0x7e3   :  { %v720_v5 = vpop.f32.mrf.mxu1  ;;  %880 = vmatpush.msra.mxu0 %v1660_v32 }
 0x7e4   :  { %v721_v6 = vadd.f32 %v1760_v62, %v720_v5 }
 0x7e5   :  { %1036 = vmatpush.msrb.mxu0 %v1685_v38 }
 0x7e6   :  { %v724_v7 = vadd.f32 %v721_v6, %v624_v30  ;;  %v1653_v30 = vld [vmem:[%s2504_s2 + $0xe0] sm:$0xff] }
 0x7e7   :  { %847 = vmatpush.msra.mxu3 %v1653_v30  ;;  %1037 = vmatpush.msrb.mxu0 %v1684_v40 }
 0x7e8   :  { %v732_v8 = vsel %vm50_vm0, %v724_v7, 0.0 }
 0x7e9   :  { %733 = vadd.xlane.f32.xlu2 %v732_v8  ;;  %1003 = vmatpush.msrb.mxu3 %v1678_v37  ;;  %v1763_v8 = vld [vmem:[%s2503_s3 + $0x8] ss:$0 sm:$0xff] }
 0x7ea   :  { %1038 = vmatpush.msrb.mxu0 %v1683_v43 }
 0x7eb   :  { %1004 = vmatpush.msrb.mxu3 %v1677_v39 }
 0x7ec   :  { %1039 = vmatpush.msrb.mxu0 %v1682_v46 }
 0x7ed   :  { %1005 = vmatpush.msrb.mxu3 %v1676_v42  ;;  %v1768_v42 = vld [vmem:[%s2503_s3 + $0xb] ss:$0 sm:$0xff] }
 0x7ef   :  { %1006 = vmatpush.msrb.mxu3 %v1675_v45 }
 0x854   :  { %v731_v9 = vpop.xlane.xlu1 %730 }
 0x855   :  { %v735_v11 = vmul.f32 %v731_v9, %v1920_v10 }
 0x857   :  { %v2180_v12 = vsub.f32 %v723_v2, %v735_v11 }
 0x859   :  { %v739_v13 = vmul.f32 %v2180_v12, %v2180_v12 }
 0x85b   :  { %v741_v14 = vsel %vm50_vm0, %v739_v13, 0.0  ;;  %v1765_v13 = vld [vmem:[%s2503_s3 + $0x7] ss:$0 sm:$0xff] }
 0x85c   :  { %742 = vadd.xlane.f32.xlu0 %v741_v14  ;;  %v734_v15 = vpop.xlane.xlu2 %733 }
 0x85d   :  { %v736_v16 = vmul.f32 %v734_v15, %v1920_v10 }
 0x85f   :  { %v2186_v17 = vsub.f32 %v724_v7, %v736_v16 }
 0x861   :  { %v740_v18 = vmul.f32 %v2186_v17, %v2186_v17 }
 0x863   :  { %v744_v19 = vsel %vm50_vm0, %v740_v18, 0.0  ;;  %v1764_v18 = vld [vmem:[%s2503_s3 + $0x6] ss:$0 sm:$0xff] }
 0x864   :  { %745 = vadd.xlane.f32.xlu1 %v744_v19 }
 0x8cf   :  { %v743_v33 = vpop.xlane.xlu0 %742 }
 0x8d0   :  { %v747_v34 = vmul.f32 %v743_v33, %v1920_v10 }
 0x8d2   :  { %v749_v35 = vadd.f32 1e-12, %v747_v34 }
 0x8d4   :  { %1809 = vrsqrt.f32 %v749_v35  ;;  %vm757_vm2 = vweird.f32 %v749_v35 }
 0x8d7   :  { %v746_v41 = vpop.xlane.xlu1 %745 }
 0x8d8   :  { %v748_v44 = vmul.f32 %v746_v41, %v1920_v10 }
 0x8da   :  { %v1810_v47 = vpop.eup %1809  ;;  %v750_v48 = vadd.f32 1e-12, %v748_v44 }
 0x8db   :  { %v752_v49 = vmul.f32 %v1810_v47, %v749_v35  ;;  %vm758_vm1 = vweird.f32 %v1810_v47 }
 0x8dc   :  { %1811 = vrsqrt.f32 %v750_v48  ;;  %vm759_vm3 = vmor %vm757_vm2, %vm758_vm1  ;;  %vm767_vm5 = vweird.f32 %v750_v48 }
 0x8dd   :  { %v753_v50 = vmul.f32 %v1810_v47, %v752_v49 }
 0x8df   :  { %v754_v51 = vmul.f32 0.5, %v753_v50 }
 0x8e1   :  { %v755_v52 = vsub.f32 1.5, %v754_v51 }
 0x8e2   :  { %v1812_v53 = vpop.eup %1811 }
 0x8e3   :  { %v756_v54 = vmul.f32 %v1810_v47, %v755_v52  ;;  %v762_v55 = vmul.f32 %v1812_v53, %v750_v48  ;;  %vm768_vm4 = vweird.f32 %v1812_v53 }
 0x8e4   :  { %vm769_vm6 = vmor %vm767_vm5, %vm768_vm4 }
 0x8e5   :  { %v760_v63 = vsel %vm759_vm3, %v1810_v47, %v756_v54  ;;  %v763_v57 = vmul.f32 %v1812_v53, %v762_v55 }
 0x8e6   :  { %v771_v59 = vmul.f32 %v760_v63, %v2180_v12  ;;  %v1674_v63 = vld [vmem:[%s2506_s4 + $0x28] sm:$0xff] }
 0x8e7   :  { %v764_v60 = vmul.f32 0.5, %v763_v57 }
 0x8e8   :  { %v776_v4 = vmul.f32 %v1761_v56, %v771_v59 }
 0x8e9   :  { %v765_v61 = vsub.f32 1.5, %v764_v60 }
 0x8ea   :  { %v2260_v62 = vadd.f32 %v1762_v58, %v776_v4 }
 0x8eb   :  { %v766_v0 = vmul.f32 %v1812_v53, %v765_v61 }
 0x8ec   :  { %1651 = vmatmul.msk.f32.vlgmr.msrb.gmra.mxu2 %vm50_vm0, %v2260_v62  ;;  %1658 = vmatmul.msk.f32.vlgmr.msra.gmra.mxu3 %vm50_vm0, %v2260_v62 }
 0x8ed   :  { %v770_v1 = vsel %vm769_vm6, %v1812_v53, %v766_v0  ;;  %1665 = vmatmul.msk.f32.vlgmr.msra.gmra.mxu0 %vm50_vm0, %v2260_v62  ;;  %v1767_v0 = vld [vmem:[%s2503_s3 + $0x9] ss:$0 sm:$0xff] }
 0x8ee   :  { %v772_v2 = vmul.f32 %v770_v1, %v2186_v17 }
 0x8f0   :  { %v777_v3 = vmul.f32 %v1761_v56, %v772_v2 }
 0x8f2   :  { %v2269_v5 = vadd.f32 %v1762_v58, %v777_v3 }
 0x8f4   :  { %1652 = vmatmul.msk.f32.gmra.mxu2 %vm50_vm0, %v2269_v5  ;;  %1659 = vmatmul.msk.f32.gmra.mxu3 %vm50_vm0, %v2269_v5 }
 0x8f5   :  { %1666 = vmatmul.msk.f32.gmra.mxu0 %vm50_vm0, %v2269_v5 }
 0x8fc   :  { %1680 = vmatmul.msk.f32.vlgmr.msrb.gmra.mxu3 %vm50_vm0, %v2260_v62 }
 0x8fd   :  { %1687 = vmatmul.msk.f32.vlgmr.msrb.gmra.mxu0 %vm50_vm0, %v2260_v62 }
 0x904   :  { %1681 = vmatmul.msk.f32.gmra.mxu3 %vm50_vm0, %v2269_v5 }
 0x905   :  { %1688 = vmatmul.msk.f32.gmra.mxu0 %vm50_vm0, %v2269_v5 }
 0x96a   :  { %v882_v6 = vpop.f32.mrf.mxu0 }
 0x96b   :  { %v883_v12 = vadd.f32 %v1763_v8, %v882_v6  ;;  %v1673_v6 = vld [vmem:[%s2506_s4 + $0x20] sm:$0xff] }
 0x96f   :  { %v849_v7 = vpop.f32.mrf.mxu3  ;;  %v816_v16 = vpop.f32.mrf.mxu2 }
 0x970   :  { %v850_v19 = vadd.f32 %v1765_v13, %v849_v7  ;;  %v817_v21 = vadd.f32 %v1764_v18, %v816_v16 }
 0x972   :  { %v885_v9 = vpop.f32.mrf.mxu0 }
 0x973   :  { %v886_v11 = vadd.f32 %v1763_v8, %v885_v9 }
 0x975   :  { %969 = vmatpush.msra.mxu2 %v886_v11 }
 0x977   :  { %970 = vmatpush.msra.mxu2 %v883_v12  ;;  %v852_v14 = vpop.f32.mrf.mxu3  ;;  %v819_v28 = vpop.f32.mrf.mxu2 }
 0x978   :  { %v853_v15 = vadd.f32 %v1765_v13, %v852_v14  ;;  %v820_v29 = vadd.f32 %v1764_v18, %v819_v28 }
 0x97a   :  { %v1041_v17 = vpop.f32.mrf.mxu0  ;;  %1667 = vmatpush.xpose.msk.msra.mxu1 %vm215_vm8, %v853_v15 }
 0x97b   :  { %v1042_v30 = vadd.f32 %v1766_v23, %v1041_v17 }
 0x97e   :  { %1668 = vmatpush.xpose.msk.msra.mxu1 %vm215_vm8, %v850_v19 }
 0x97f   :  { %v1008_v61 = vpop.f32.mrf.mxu3 }
 0x980   :  { %v1009_v1 = vadd.f32 %v1767_v0, %v1008_v61 }
 0x981   :  { %1669 = vmatmul.msk.f32.vlgmr.msra.gmra.mxu1 %vm215_vm8, %v817_v21 }
 0x982   :  { %1069 = vmatpush.msrb.mxu1 %v1692_v20  ;;  %v1044_v25 = vpop.f32.mrf.mxu0 }
 0x983   :  { %v1045_v26 = vadd.f32 %v1766_v23, %v1044_v25 }
 0x984   :  { %1070 = vmatpush.msrb.mxu1 %v1691_v22 }
 0x985   :  { %1696 = vmatpush.xpose.msk.msrb.mxu2 %vm215_vm8, %v1045_v26 }
 0x986   :  { %1071 = vmatpush.msrb.mxu1 %v1690_v24 }
 0x987   :  { %v1011_v2 = vpop.f32.mrf.mxu3 }
 0x988   :  { %1072 = vmatpush.msrb.mxu1 %v1689_v27  ;;  %v1012_v3 = vadd.f32 %v1767_v0, %v1011_v2 }
 0x989   :  { %1697 = vmatpush.xpose.msk.msrb.mxu2 %vm215_vm8, %v1042_v30  ;;  %1670 = vmatmul.msk.f32.gmra.mxu1 %vm215_vm8, %v820_v29 }
 0x98a   :  { %1222 = vmatpush.msra.mxu1 %v1674_v63 }
 0x98c   :  { %1223 = vmatpush.msra.mxu1 %v1673_v6 }
 0x991   :  { %1694 = vmatmul.msk.f32.vlgmr.msrb.gmra.mxu1 %vm50_vm0, %v2260_v62 }
 0x999   :  { %1695 = vmatmul.msk.f32.gmra.mxu1 %vm50_vm0, %v2269_v5 }
 0x9fe   :  { %v917_v32 = vpop.f32.mrf.mxu1 }
 0x9ff   :  { %v923_v33 = vmul.f32 0.25, %v917_v32 }
 0xa01   :  { %v925_v34 = vadd.f32 %v923_v33, %v2065_v31 }
 0xa03   :  { %v927_v35 = vsel %vm215_vm8, %v925_v34, -inf }
 0xa04   :  { %928 = vmax.xlane.f32.xlu2 %v927_v35 }
 0xa06   :  { %v920_v37 = vpop.f32.mrf.mxu1 }
 0xa07   :  { %v924_v38 = vmul.f32 0.25, %v920_v37 }
 0xa09   :  { %v926_v39 = vadd.f32 %v924_v38, %v2072_v36 }
 0xa0b   :  { %v930_v40 = vsel %vm215_vm8, %v926_v39, -inf }
 0xa0c   :  { %931 = vmax.xlane.f32.xlu0 %v930_v40 }
 0xa0e   :  { %v1074_v41 = vpop.f32.mrf.mxu1 }
 0xa0f   :  { %v1075_v45 = vadd.f32 %v1768_v42, %v1074_v41 }
 0xa16   :  { %v1077_v43 = vpop.f32.mrf.mxu1 }
 0xa17   :  { %v1078_v44 = vadd.f32 %v1768_v42, %v1077_v43 }
 0xa19   :  { %1161 = vmatpush.msra.mxu3 %v1078_v44 }
 0xa1b   :  { %1162 = vmatpush.msra.mxu3 %v1075_v45 }
 0xa77   :  { %v929_v46 = vpop.xlane.xlu2 %928 }
 0xa78   :  { %v933_v47 = vsub.f32 %v925_v34, %v929_v46  ;;  %v1702_v34 = vld [vmem:[%s2506_s4 + $0x30] sm:$0xff] }
 0xa7a   :  { %v935_v48 = vmul.f32 1.442695, %v933_v47 }
 0xa7c   :  { %1813 = vpow2.f32 %v935_v48 }
 0xa7f   :  { %v932_v49 = vpop.xlane.xlu0 %931 }
 0xa80   :  { %v934_v50 = vsub.f32 %v926_v39, %v932_v49  ;;  %v1769_v39 = vld [vmem:[%s2502_s8 + $0x9] ss:$0 sm:$0xff] }
 0xa82   :  { %v1814_v51 = vpop.eup %1813  ;;  %v937_v52 = vmul.f32 1.442695, %v934_v50 }
 0xa83   :  { %v939_v53 = vsel %vm215_vm8, %v1814_v51, 0.0 }
 0xa84   :  { %1815 = vpow2.f32 %v937_v52  ;;  %940 = vadd.xlane.f32.xlu1 %v939_v53 }
 0xa8a   :  { %v1816_v54 = vpop.eup %1815 }
 0xa8b   :  { %v942_v55 = vsel %vm215_vm8, %v1816_v54, 0.0 }
 0xa8c   :  { %943 = vadd.xlane.f32.xlu2 %v942_v55 }
 0xaf7   :  { %v941_v56 = vpop.xlane.xlu1 %940 }
 0xaf8   :  { %1817 = vrcp.f32 %v941_v56 }
 0xafe   :  { %v1818_v57 = vpop.eup %1817 }
 0xaff   :  { %v947_v58 = vmul.f32 %v1818_v57, %v1814_v51  ;;  %v944_v59 = vpop.xlane.xlu2 %943 }
 0xb00   :  { %1819 = vrcp.f32 %v944_v59  ;;  %v1713_v59 = vld [vmem:[%s2508_s5 + $0x30] sm:$0xff] }
 0xb01   :  { %1671 = vmatmul.msk.f32.vlgmr.msra.gmra.mxu2 %vm215_vm8, %v947_v58 }
 0xb06   :  { %v1820_v60 = vpop.eup %1819 }
 0xb07   :  { %v948_v4 = vmul.f32 %v1820_v60, %v1816_v54  ;;  %v1712_v60 = vld [vmem:[%s2508_s5 + $0x28] sm:$0xff] }
 0xb09   :  { %1672 = vmatmul.msk.f32.gmra.mxu2 %vm215_vm8, %v948_v4  ;;  %v1711_v4 = vld [vmem:[%s2508_s5 + $0x20] sm:$0xff] }
 0xb11   :  { %1698 = vmatmul.msk.f32.vlgmr.msrb.gmra.mxu2 %vm215_vm8, %v1009_v1 }
 0xb19   :  { %1699 = vmatmul.msk.f32.gmra.mxu2 %vm215_vm8, %v1012_v3 }
 0xb84   :  { %v972_v7 = vpop.f32.mrf.mxu2 }
 0xb85   :  { %1706 = vmatmul.msk.f32.vlgmr.msra.gmra.mxu1 %vm215_vm8, %v972_v7 }
 0xb8c   :  { %v975_v8 = vpop.f32.mrf.mxu2 }
 0xb8d   :  { %1707 = vmatmul.msk.f32.gmra.mxu1 %vm215_vm8, %v975_v8 }
 0xb94   :  { %v1109_v9 = vpop.f32.mrf.mxu2 }
 0xb95   :  { %v1115_v11 = vmul.f32 0.25, %v1109_v9 }
 0xb97   :  { %v1117_v12 = vadd.f32 %v1115_v11, %v2065_v31 }
 0xb99   :  { %v1119_v13 = vsel %vm215_vm8, %v1117_v12, -inf }
 0xb9a   :  { %1120 = vmax.xlane.f32.xlu0 %v1119_v13 }
 0xb9c   :  { %v1112_v14 = vpop.f32.mrf.mxu2 }
 0xb9d   :  { %v1116_v15 = vmul.f32 0.25, %v1112_v14 }
 0xb9f   :  { %v1118_v16 = vadd.f32 %v1116_v15, %v2072_v36  ;;  %v1703_v36 = vld [vmem:[%s2506_s4 + $0x38] sm:$0xff] }
 0xba0   :  { %1193 = vmatpush.msra.mxu0 %v1703_v36 }
 0xba1   :  { %v1122_v17 = vsel %vm215_vm8, %v1118_v16, -inf }
 0xba2   :  { %1123 = vmax.xlane.f32.xlu1 %v1122_v17  ;;  %1194 = vmatpush.msra.mxu0 %v1702_v34  ;;  %v1720_v34 = vld [vmem:[%s2509_s7 + $0x50] sm:$0xff] }
 0xc02   :  { %v1225_v38 = vpop.f32.mrf.mxu1 }
 0xc0a   :  { %v1228_v45 = vpop.f32.mrf.mxu1 }
 0xc0d   :  { %v1121_v18 = vpop.xlane.xlu0 %1120 }
 0xc0e   :  { %v1125_v19 = vsub.f32 %v1117_v12, %v1121_v18 }
 0xc10   :  { %v1127_v20 = vmul.f32 1.442695, %v1125_v19 }
 0xc12   :  { %1821 = vpow2.f32 %v1127_v20  ;;  %v1771_v20 = vld [vmem:[%s2502_s8 + $0xb] ss:$0 sm:$0xff] }
 0xc15   :  { %v1124_v21 = vpop.xlane.xlu1 %1123 }
 0xc16   :  { %v1126_v22 = vsub.f32 %v1118_v16, %v1124_v21  ;;  %v1770_v16 = vld [vmem:[%s2502_s8 + $0xa] ss:$0 sm:$0xff] }
 0xc18   :  { %v1822_v23 = vpop.eup %1821  ;;  %v1129_v24 = vmul.f32 1.442695, %v1126_v22 }
 0xc19   :  { %v1131_v31 = vsel %vm215_vm8, %v1822_v23, 0.0 }
 0xc1a   :  { %1823 = vpow2.f32 %v1129_v24  ;;  %1132 = vadd.xlane.f32.xlu2 %v1131_v31 }
 0xc20   :  { %v1824_v25 = vpop.eup %1823 }
 0xc21   :  { %v1134_v26 = vsel %vm215_vm8, %v1824_v25, 0.0 }
 0xc22   :  { %1135 = vadd.xlane.f32.xlu0 %v1134_v26 }
 0xc8d   :  { %v1133_v27 = vpop.xlane.xlu2 %1132 }
 0xc8e   :  { %1825 = vrcp.f32 %v1133_v27 }
 0xc94   :  { %v1826_v28 = vpop.eup %1825 }
 0xc95   :  { %v1139_v29 = vmul.f32 %v1826_v28, %v1822_v23  ;;  %v1136_v30 = vpop.xlane.xlu0 %1135  ;;  %v1725_v28 = vld [vmem:[%s2509_s7 + $0x78] sm:$0xff] }
 0xc96   :  { %1827 = vrcp.f32 %v1136_v30  ;;  %1383 = vmatpush.msrb.mxu3 %v1725_v28  ;;  %v1723_v30 = vld [vmem:[%s2509_s7 + $0x68] sm:$0xff] }
 0xc97   :  { %1700 = vmatmul.msk.f32.vlgmr.msra.gmra.mxu3 %vm215_vm8, %v1139_v29  ;;  %v1724_v29 = vld [vmem:[%s2509_s7 + $0x70] sm:$0xff] }
 0xc98   :  { %1384 = vmatpush.msrb.mxu3 %v1724_v29 }
 0xc9a   :  { %1385 = vmatpush.msrb.mxu3 %v1723_v30 }
 0xc9c   :  { %v1828_v32 = vpop.eup %1827 }
 0xc9d   :  { %v1140_v33 = vmul.f32 %v1828_v32, %v1824_v25  ;;  %v1722_v32 = vld [vmem:[%s2509_s7 + $0x60] sm:$0xff] }
 0xc9e   :  { %1386 = vmatpush.msrb.mxu3 %v1722_v32 }
 0xc9f   :  { %1701 = vmatmul.msk.f32.gmra.mxu3 %vm215_vm8, %v1140_v33  ;;  %v1721_v33 = vld [vmem:[%s2509_s7 + $0x58] sm:$0xff] }
 0xca0   :  { %1387 = vmatpush.msrb.mxu3 %v1721_v33 }
 0xca2   :  { %1388 = vmatpush.msrb.mxu3 %v1720_v34 }
 0xd1a   :  { %v1164_v35 = vpop.f32.mrf.mxu3 }
 0xd1b   :  { %1704 = vmatmul.msk.f32.vlgmr.msra.gmra.mxu0 %vm215_vm8, %v1164_v35  ;;  %v1719_v35 = vld [vmem:[%s2509_s7 + $0x48] sm:$0xff] }
 0xd1c   :  { %1389 = vmatpush.msrb.mxu3 %v1719_v35 }
 0xd22   :  { %v1167_v37 = vpop.f32.mrf.mxu3 }
 0xd23   :  { %1705 = vmatmul.msk.f32.gmra.mxu0 %vm215_vm8, %v1167_v37  ;;  %v1718_v37 = vld [vmem:[%s2509_s7 + $0x40] sm:$0xff] }
 0xd24   :  { %1390 = vmatpush.msrb.mxu3 %v1718_v37 }
 0xd98   :  { %v1196_v40 = vpop.f32.mrf.mxu0 }
 0xd99   :  { %v1226_v41 = vadd.f32 %v1225_v38, %v1196_v40  ;;  %v1772_v38 = vld [vmem:[%s2507_s6 + $0x1] ss:$0 sm:$0xff] }
 0xd9b   :  { %v1236_v42 = vadd.f32 %v1769_v39, %v1226_v41 }
 0xd9d   :  { %v1238_v43 = vadd.f32 %v1236_v42, %v2260_v62 }
 0xd9f   :  { %v1244_v44 = vsel %vm50_vm0, %v1238_v43, 0.0 }
 0xda0   :  { %1245 = vadd.xlane.f32.xlu1 %v1244_v44  ;;  %v1199_v46 = vpop.f32.mrf.mxu0 }
 0xda1   :  { %v1229_v47 = vadd.f32 %v1228_v45, %v1199_v46 }
 0xda3   :  { %v1237_v48 = vadd.f32 %v1769_v39, %v1229_v47 }
 0xda5   :  { %v1239_v49 = vadd.f32 %v1237_v48, %v2269_v5  ;;  %v1714_v5 = vld [vmem:[%s2508_s5 + $0x38] sm:$0xff] }
 0xda6   :  { %1326 = vmatpush.msra.mxu2 %v1714_v5  ;;  %v1773_v5 = vld [vmem:[%s2502_s8 + $0xc] ss:$0 sm:$0xff] }
 0xda7   :  { %v1247_v50 = vsel %vm50_vm0, %v1239_v49, 0.0 }
 0xda8   :  { %1248 = vadd.xlane.f32.xlu2 %v1247_v50  ;;  %1327 = vmatpush.msra.mxu2 %v1713_v59 }
 0xdaa   :  { %1328 = vmatpush.msra.mxu2 %v1712_v60 }
 0xdac   :  { %1329 = vmatpush.msra.mxu2 %v1711_v4 }
 0xe13   :  { %v1246_v51 = vpop.xlane.xlu1 %1245 }
 0xe14   :  { %v1250_v52 = vmul.f32 %v1246_v51, %v1920_v10 }
 0xe16   :  { %v1252_v53 = vsub.f32 %v1238_v43, %v1250_v52 }
 0xe18   :  { %v1254_v54 = vmul.f32 %v1252_v53, %v1252_v53 }
 0xe1a   :  { %v1256_v55 = vsel %vm50_vm0, %v1254_v54, 0.0 }
 0xe1b   :  { %v1249_v62 = vpop.xlane.xlu2 %1248  ;;  %1257 = vadd.xlane.f32.xlu0 %v1256_v55 }
 0xe1c   :  { %v1251_v56 = vmul.f32 %v1249_v62, %v1920_v10 }
 0xe1e   :  { %v1253_v63 = vsub.f32 %v1239_v49, %v1251_v56 }
 0xe20   :  { %v1255_v57 = vmul.f32 %v1253_v63, %v1253_v63 }
 0xe22   :  { %v1259_v58 = vsel %vm50_vm0, %v1255_v57, 0.0 }
 0xe23   :  { %1260 = vadd.xlane.f32.xlu1 %v1259_v58 }
 0xe8e   :  { %v1258_v61 = vpop.xlane.xlu0 %1257 }
 0xe8f   :  { %v1262_v0 = vmul.f32 %v1258_v61, %v1920_v10 }
 0xe91   :  { %v1264_v1 = vadd.f32 1e-12, %v1262_v0 }
 0xe93   :  { %1829 = vrsqrt.f32 %v1264_v1  ;;  %vm1272_vm8 = vweird.f32 %v1264_v1 }
 0xe96   :  { %v1261_v2 = vpop.xlane.xlu1 %1260 }
 0xe97   :  { %v1263_v3 = vmul.f32 %v1261_v2, %v1920_v10 }
 0xe99   :  { %v1830_v6 = vpop.eup %1829  ;;  %v1265_v7 = vadd.f32 1e-12, %v1263_v3 }
 0xe9a   :  { %v1267_v8 = vmul.f32 %v1830_v6, %v1264_v1  ;;  %vm1273_vm7 = vweird.f32 %v1830_v6 }
 0xe9b   :  { %1831 = vrsqrt.f32 %v1265_v7  ;;  %vm1274_vm9 = vmor %vm1272_vm8, %vm1273_vm7  ;;  %vm1282_vm11 = vweird.f32 %v1265_v7 }
 0xe9c   :  { %v1268_v9 = vmul.f32 %v1830_v6, %v1267_v8 }
 0xe9e   :  { %v1269_v11 = vmul.f32 0.5, %v1268_v9 }
 0xea0   :  { %v1270_v12 = vsub.f32 1.5, %v1269_v11 }
 0xea1   :  { %v1832_v13 = vpop.eup %1831 }
 0xea2   :  { %v1271_v14 = vmul.f32 %v1830_v6, %v1270_v12  ;;  %v1277_v15 = vmul.f32 %v1832_v13, %v1265_v7  ;;  %vm1283_vm10 = vweird.f32 %v1832_v13 }
 0xea3   :  { %vm1284_vm12 = vmor %vm1282_vm11, %vm1283_vm10 }
 0xea4   :  { %v1275_v17 = vsel %vm1274_vm9, %v1830_v6, %v1271_v14  ;;  %v1278_v18 = vmul.f32 %v1832_v13, %v1277_v15 }
 0xea5   :  { %v1286_v19 = vmul.f32 %v1275_v17, %v1252_v53  ;;  %v1461_v17 = vld [vmem:[%s2510_s9 + $0x18] sm:$0xff] }
 0xea6   :  { %v1279_v21 = vmul.f32 0.5, %v1278_v18  ;;  %v1739_v18 = vld [vmem:[%s2511_s10 + $0x38] sm:$0xff]  ;;  %1485 = vmatpush.msrb.mxu0 %v1461_v17 }
 0xea7   :  { %v1291_v22 = vmul.f32 %v1770_v16, %v1286_v19  ;;  %1559 = vmatpush.msrb.mxu2 %v1739_v18  ;;  %v1460_v19 = vld [vmem:[%s2510_s9 + $0x10] sm:$0xff] }
 0xea8   :  { %v1280_v23 = vsub.f32 1.5, %v1279_v21  ;;  %1486 = vmatpush.msrb.mxu0 %v1460_v19  ;;  %v1459_v21 = vld [vmem:[%s2510_s9 + $0x8] sm:$0xff] }
 0xea9   :  { %v1296_v24 = vadd.f32 %v1771_v20, %v1291_v22  ;;  %v1737_v22 = vld [vmem:[%s2511_s10 + $0x28] sm:$0xff] }
 0xeaa   :  { %v1281_v31 = vmul.f32 %v1832_v13, %v1280_v23  ;;  %1487 = vmatpush.msrb.mxu0 %v1459_v21  ;;  %v1458_v23 = vld [vmem:[%s2510_s9] sm:$0xff] }
 0xeab   :  { %1716 = vmatmul.msk.f32.vlgmr.msra.gmra.mxu2 %vm50_vm0, %v1296_v24 }
 0xeac   :  { %v1285_v25 = vsel %vm1284_vm12, %v1832_v13, %v1281_v31  ;;  %1488 = vmatpush.msrb.mxu0 %v1458_v23 }
 0xead   :  { %v1287_v26 = vmul.f32 %v1285_v25, %v1253_v63 }
 0xeaf   :  { %v1292_v36 = vmul.f32 %v1770_v16, %v1287_v26 }
 0xeb1   :  { %v1297_v27 = vadd.f32 %v1771_v20, %v1292_v36  ;;  %v1738_v20 = vld [vmem:[%s2511_s10 + $0x30] sm:$0xff]  ;;  %v1501_v36 = vld [vmem:[%s2511_s10 + $0x18] sm:$0xff] }
 0xeb2   :  { %1560 = vmatpush.msrb.mxu2 %v1738_v20  ;;  %1524 = vmatpush.msrb.mxu1 %v1501_v36 }
 0xeb3   :  { %1717 = vmatmul.msk.f32.gmra.mxu2 %vm50_vm0, %v1297_v27 }
 0xeb4   :  { %1561 = vmatpush.msrb.mxu2 %v1737_v22 }
 0xf2e   :  { %v1331_v39 = vpop.f32.mrf.mxu2 }
 0xf2f   :  { %v1332_v40 = vadd.f32 %v1772_v38, %v1331_v39 }
 0xf31   :  { %v1337_v41 = vmul.f32 %v1332_v40, %v1332_v40 }
 0xf33   :  { %v1339_v42 = vmul.f32 %v1337_v41, %v1332_v40 }
 0xf35   :  { %v1341_v43 = vmul.f32 0.044715, %v1339_v42 }
 0xf36   :  { %v1334_v44 = vpop.f32.mrf.mxu2 }
 0xf37   :  { %v1343_v45 = vadd.f32 %v1341_v43, %v1332_v40  ;;  %v1335_v46 = vadd.f32 %v1772_v38, %v1334_v44  ;;  %v1775_v43 = vld [vmem:[%s2502_s8 + $0xe] ss:$0 sm:$0xff] }
 0xf39   :  { %v1345_v47 = vmul.f32 0.7978846, %v1343_v45  ;;  %v1338_v48 = vmul.f32 %v1335_v46, %v1335_v46 }
 0xf3b   :  { %1833 = vtanh.f32 %v1345_v47  ;;  %v1340_v49 = vmul.f32 %v1338_v48, %v1335_v46 }
 0xf3d   :  { %v1342_v50 = vmul.f32 0.044715, %v1340_v49 }
 0xf3f   :  { %v1344_v51 = vadd.f32 %v1342_v50, %v1335_v46 }
 0xf41   :  { %v1834_v52 = vpop.eup %1833  ;;  %v1346_v53 = vmul.f32 0.7978846, %v1344_v51 }
 0xf42   :  { %v1349_v54 = vadd.f32 1.0, %v1834_v52 }
 0xf43   :  { %1835 = vtanh.f32 %v1346_v53  ;;  %v1500_v53 = vld [vmem:[%s2511_s10 + $0x10] sm:$0xff] }
 0xf44   :  { %v1351_v55 = vmul.f32 0.5, %v1349_v54  ;;  %1525 = vmatpush.msrb.mxu1 %v1500_v53  ;;  %v1499_v54 = vld [vmem:[%s2511_s10 + $0x8] sm:$0xff] }
 0xf46   :  { %v1353_v62 = vmul.f32 %v1351_v55, %v1332_v40  ;;  %v1774_v40 = vld [vmem:[%s2502_s8 + $0xd] ss:$0 sm:$0xff]  ;;  %1526 = vmatpush.msrb.mxu1 %v1499_v54  ;;  %v1498_v55 = vld [vmem:[%s2511_s10] sm:$0xff] }
 0xf48   :  { %1727 = vmatmul.msk.f32.vlgmr.msrb.gmra.mxu3 %vm693_vm15, %v1353_v62  ;;  %1527 = vmatpush.msrb.mxu1 %v1498_v55  ;;  %v1776_v62 = vld [vmem:[%s2502_s8 + $0x2] ss:$0 sm:$0xff] }
 0xf49   :  { %v1836_v56 = vpop.eup %1835 }
 0xf4a   :  { %v1350_v63 = vadd.f32 1.0, %v1836_v56 }
 0xf4c   :  { %v1352_v57 = vmul.f32 0.5, %v1350_v63 }
 0xf4e   :  { %v1354_v58 = vmul.f32 %v1352_v57, %v1335_v46 }
 0xf50   :  { %1728 = vmatmul.msk.f32.gmra.mxu3 %vm693_vm15, %v1354_v58  ;;  %v1777_v58 = vld [vmem:[%s2512_s11 + $0x1] ss:$0 sm:$0xff] }
 0xfcb   :  { %v1392_v59 = vpop.f32.mrf.mxu3 }
 0xfcc   :  { %v1393_v60 = vadd.f32 %v1773_v5, %v1392_v59 }
 0xfce   :  { %v1398_v4 = vadd.f32 %v1393_v60, %v1296_v24  ;;  %v1736_v24 = vld [vmem:[%s2511_s10 + $0x20] sm:$0xff] }
 0xfcf   :  { %1562 = vmatpush.msrb.mxu2 %v1736_v24 }
 0xfd0   :  { %v1404_v61 = vsel %vm50_vm0, %v1398_v4, 0.0 }
 0xfd1   :  { %1405 = vadd.xlane.f32.xlu2 %v1404_v61 }
 0xfd3   :  { %v1395_v0 = vpop.f32.mrf.mxu3 }
 0xfd4   :  { %v1396_v1 = vadd.f32 %v1773_v5, %v1395_v0 }
 0xfd6   :  { %v1399_v2 = vadd.f32 %v1396_v1, %v1297_v27 }
 0xfd8   :  { %v1407_v3 = vsel %vm50_vm0, %v1399_v2, 0.0 }
 0xfd9   :  { %1408 = vadd.xlane.f32.xlu0 %v1407_v3 }
0x1044   :  { %v1406_v6 = vpop.xlane.xlu2 %1405 }
0x1045   :  { %v1410_v7 = vmul.f32 %v1406_v6, %v1920_v10 }
0x1047   :  { %v1412_v8 = vsub.f32 %v1398_v4, %v1410_v7 }
0x1049   :  { %v1414_v9 = vmul.f32 %v1412_v8, %v1412_v8 }
0x104b   :  { %v1416_v11 = vsel %vm50_vm0, %v1414_v9, 0.0 }
0x104c   :  { %1417 = vadd.xlane.f32.xlu1 %v1416_v11  ;;  %v1409_v12 = vpop.xlane.xlu0 %1408 }
0x104d   :  { %v1411_v13 = vmul.f32 %v1409_v12, %v1920_v10 }
0x104f   :  { %v1413_v14 = vsub.f32 %v1399_v2, %v1411_v13  ;;  %v1778_v2 = vld [vmem:[%s2512_s11] ss:$0 sm:$0xff] }
0x1051   :  { %v1415_v15 = vmul.f32 %v1413_v14, %v1413_v14 }
0x1053   :  { %v1419_v16 = vsel %vm50_vm0, %v1415_v15, 0.0 }
0x1054   :  { %1420 = vadd.xlane.f32.xlu2 %v1419_v16 }
0x10bf   :  { %v1418_v31 = vpop.xlane.xlu1 %1417 }
0x10c0   :  { %v1422_v25 = vmul.f32 %v1418_v31, %v1920_v10 }
0x10c2   :  { %v1424_v26 = vadd.f32 1e-12, %v1422_v25 }
0x10c4   :  { %1837 = vrsqrt.f32 %v1424_v26  ;;  %vm1432_vm14 = vweird.f32 %v1424_v26 }
0x10c7   :  { %v1421_v27 = vpop.xlane.xlu2 %1420 }
0x10c8   :  { %v1423_v28 = vmul.f32 %v1421_v27, %v1920_v10 }
0x10ca   :  { %v1838_v29 = vpop.eup %1837  ;;  %v1425_v30 = vadd.f32 1e-12, %v1423_v28 }
0x10cb   :  { %v1427_v32 = vmul.f32 %v1838_v29, %v1424_v26  ;;  %vm1433_vm13 = vweird.f32 %v1838_v29 }
0x10cc   :  { %1839 = vrsqrt.f32 %v1425_v30  ;;  %vm1434_vm15 = vmor %vm1432_vm14, %vm1433_vm13  ;;  %vm1442_vm2 = vweird.f32 %v1425_v30 }
0x10cd   :  { %v1428_v33 = vmul.f32 %v1838_v29, %v1427_v32 }
0x10cf   :  { %v1429_v34 = vmul.f32 0.5, %v1428_v33 }
0x10d1   :  { %v1430_v35 = vsub.f32 1.5, %v1429_v34 }
0x10d2   :  { %v1840_v37 = vpop.eup %1839 }
0x10d3   :  { %v1431_v38 = vmul.f32 %v1838_v29, %v1430_v35  ;;  %v1437_v39 = vmul.f32 %v1840_v37, %v1425_v30  ;;  %vm1443_vm1 = vweird.f32 %v1840_v37 }
0x10d4   :  { %vm1444_vm3 = vmor %vm1442_vm2, %vm1443_vm1 }
0x10d5   :  { %v1435_v41 = vsel %vm1434_vm15, %v1838_v29, %v1431_v38  ;;  %v1438_v42 = vmul.f32 %v1840_v37, %v1437_v39 }
0x10d6   :  { %v1446_v10 = vmul.f32 %v1435_v41, %v1412_v8 }
0x10d7   :  { %v1439_v44 = vmul.f32 0.5, %v1438_v42 }
0x10d8   :  { %v1451_v45 = vmul.f32 %v1774_v40, %v1446_v10 }
0x10d9   :  { %v1440_v46 = vsub.f32 1.5, %v1439_v44 }
0x10da   :  { %v1456_v47 = vadd.f32 %v1775_v43, %v1451_v45 }
0x10db   :  { %v1441_v48 = vmul.f32 %v1840_v37, %v1440_v46 }
0x10dc   :  { %1732 = vmatmul.msk.f32.vlgmr.msrb.gmra.mxu0 %vm50_vm0, %v1456_v47  ;;  %1741 = vmatmul.msk.f32.vlgmr.msrb.gmra.mxu2 %vm50_vm0, %v1456_v47 }
0x10dd   :  { %v1445_v49 = vsel %vm1444_vm3, %v1840_v37, %v1441_v48 }
0x10de   :  { %v1447_v50 = vmul.f32 %v1445_v49, %v1413_v14 }
0x10e0   :  { %v1452_v51 = vmul.f32 %v1774_v40, %v1447_v50 }
0x10e2   :  { %v1457_v52 = vadd.f32 %v1775_v43, %v1452_v51 }
0x10e4   :  { %1733 = vmatmul.msk.f32.gmra.mxu0 %vm50_vm0, %v1457_v52  ;;  %1742 = vmatmul.msk.f32.gmra.mxu2 %vm50_vm0, %v1457_v52 }
0x1159   :  { %v1490_v56 = vpop.f32.mrf.mxu0 }
0x115a   :  { %v1491_v63 = vadd.f32 %v1776_v62, %v1490_v56 }
0x115c   :  { %v1496_v57 = vmax.f32 %v1491_v63, 0.0 }
0x115e   :  { %1734 = vmatmul.msk.f32.vlgmr.msrb.gmra.mxu1 %vm50_vm0, %v1496_v57 }
0x115f   :  { %v1564_v5 = vpop.f32.mrf.mxu2 }
0x1160   :  { %v1565_v59 = vadd.f32 %v1777_v58, %v1564_v5 }
0x1161   :  { %v1493_v60 = vpop.f32.mrf.mxu0 }
0x1162   :  { %1570 = vst [vmem:[%s2513_s13] sm:$0xff] %v1565_v59  ;;  %v1494_v4 = vadd.f32 %v1776_v62, %v1493_v60 }
0x1164   :  { %v1497_v61 = vmax.f32 %v1494_v4, 0.0 }
0x1166   :  { %1735 = vmatmul.msk.f32.gmra.mxu1 %vm50_vm0, %v1497_v61 }
0x1167   :  { %v1567_v0 = vpop.f32.mrf.mxu2 }
0x1168   :  { %v1568_v1 = vadd.f32 %v1777_v58, %v1567_v0 }
0x116a   :  { %1571 = vst [vmem:[%s2513_s13 + $0x8] sm:$0xff] %v1568_v1 }
0x11db   :  { %v1529_v3 = vpop.f32.mrf.mxu1 }
0x11dc   :  { %v1530_v6 = vadd.f32 %v1778_v2, %v1529_v3 }
0x11de   :  { %1535 = vst [vmem:[%s2514_s12] sm:$0xff] %v1530_v6 }
0x11e3   :  { %v1532_v7 = vpop.f32.mrf.mxu1 }
0x11e4   :  { %v1533_v8 = vadd.f32 %v1778_v2, %v1532_v7 }
0x11e6   :  { %1536 = vst [vmem:[%s2514_s12 + $0x8] sm:$0xff] %v1533_v8 }

</bundles_post_ra>
